<compile_context>
chip_gen: v5e
topology: v5e:2x2
jax: 0.10.0
libtpu: 0.0.40
codegen_flags: <defaults>
</compile_context>

<pallas_src>
import jax
import jax.numpy as jnp
from jax import lax
from jax.experimental import pallas as pl
from jax.experimental.pallas import tpu as pltpu


# ----------------------------------------------------------------------------
# Packed weight-slab layout (static, shared by preprocess_params and the kernel)
# ----------------------------------------------------------------------------
def _align8(n):
    return (n + 7) & ~7


def _make_layout():
    entries = [
        ("A1_0", 130, 28), ("A1_1", 130, 28), ("A1_2", 130, 28),
        ("b1c", 130, 1),
        ("PR1_0", 65, 130), ("PR1_1", 65, 130),
        ("PC1_0", 26, 13), ("PC1_1", 26, 13),
        ("A2_0", 110, 65), ("A2_1", 110, 65), ("A2_2", 110, 65),
        ("b2c", 110, 1),
        ("PR2_0", 50, 110), ("PR2_1", 50, 110),
        ("PC2_0", 11, 5), ("PC2_1", 11, 5),
        ("WF_0", 10, 50), ("WF_1", 10, 50), ("WF_2", 10, 50),
        ("WF_3", 10, 50), ("WF_4", 10, 50),
        ("bfc", 10, 1),
    ]
    layout, off = {}, 0
    for name, r, c in entries:
        layout[name] = (off, r, c)          # every slab starts 8-row aligned, lane 0
        off += _align8(r)
    return layout, off, 130


_LAYOUT, _W_ROWS, _W_COLS = _make_layout()   # (1440, 130) float32 slab (~750 KB)


# ----------------------------------------------------------------------------
# Fused Pallas kernel: conv1 + ReLU + pool1 + conv2 + pool2 + ReLU + fcl
# ----------------------------------------------------------------------------
def _fused_cnn_kernel(x_ref, w_ref, o_ref):
    """Activation layout: 2-D (C*H, W) slabs; row index = c*H + h, col = w.

    conv  : y = sum_kw  A[kw] @ act[:, kw:kw+W_out]      (banded weight matmuls)
    pool  : mc = max(y @ PCa, y @ PCb); z = max(PRa @ mc, PRb @ mc)
    fcl   : out = sum_j WF[j] @ z2[:, j:j+1] + bf
    """
    f32 = jnp.float32

    def dot(a, b):
        return jnp.dot(a, b, preferred_element_type=f32)

    def W(name):                              # static, aligned slice of the weight slab
        off, r, c = _LAYOUT[name]
        return w_ref[off:off + r, 0:c]

    # ---- conv1 (1 -> 5, k=3) + ReLU --------------------------------- (130, 26)
    y1 = dot(W("A1_0"), x_ref[:, 0:26])
    y1 = y1 + dot(W("A1_1"), x_ref[:, 1:27])
    y1 = y1 + dot(W("A1_2"), x_ref[:, 2:28])
    y1 = jnp.maximum(y1 + W("b1c"), 0.0)

    # ---- maxpool 2x2 (stride 2) -------------------------------------- (65, 13)
    mc1 = jnp.maximum(dot(y1, W("PC1_0")), dot(y1, W("PC1_1")))        # (130, 13)
    z1 = jnp.maximum(dot(W("PR1_0"), mc1), dot(W("PR1_1"), mc1))       # (65, 13)

    # ---- conv2 (5 -> 10, k=3) ---------------------------------------- (110, 11)
    y2 = dot(W("A2_0"), z1[:, 0:11])
    y2 = y2 + dot(W("A2_1"), z1[:, 1:12])
    y2 = y2 + dot(W("A2_2"), z1[:, 2:13])
    y2 = y2 + W("b2c")

    # ---- maxpool 2x2 (stride 2) + ReLU --------------------------------- (50, 5)
    mc2 = jnp.maximum(dot(y2, W("PC2_0")), dot(y2, W("PC2_1")))        # (110, 5)
    z2 = jnp.maximum(dot(W("PR2_0"), mc2), dot(W("PR2_1"), mc2))       # (50, 5)
    z2 = jnp.maximum(z2, 0.0)

    # ---- fcl (250 -> 10), torch .view(1, -1) order is (c, i, j) -------- (10, 1)
    acc = W("bfc")
    for j in range(5):
        acc = acc + dot(W("WF_%d" % j), z2[:, j:j + 1])
    o_ref[...] = acc


def my_first_cnn_forward(x, w_packed):
    """x: (1, 28, 28) float32 in [0, 1] (i.e. after transforms.ToTensor/view)."""
    vmem = pl.BlockSpec(memory_space=pltpu.MemorySpace.VMEM)
    out = pl.pallas_call(
        _fused_cnn_kernel,
        out_shape=jax.ShapeDtypeStruct((10, 1), jnp.float32),
        in_specs=[vmem, vmem],
        out_specs=vmem,
    )(x.reshape(28, 28), w_packed)
    return out.reshape(1, 10)


# ----------------------------------------------------------------------------
# One-time weight repacking (host/trace side, off the jitted hot path)
# ----------------------------------------------------------------------------
def preprocess_params(params):
    w1, b1, w2, b2, wf, bf = params
    f32 = jnp.float32

    # conv1: y1[(co,i), j] = sum_kw (A1[kw] @ x[:, kw:kw+26])[(co,i), j]
    #   A1[kw][co*26+i, h] = w1[co, 0, h-i, kw]  for 0 <= h-i <= 2
    S1 = jnp.stack([jnp.eye(26, 28, k=kh, dtype=f32) for kh in range(3)])       # (3,26,28)
    A1 = [jnp.einsum("ok,kih->oih", w1[:, 0, :, kw].astype(f32), S1).reshape(130, 28)
          for kw in range(3)]
    b1c = jnp.repeat(b1.astype(f32), 26)[:, None]                               # (130, 1)

    # 0/1 selection matrices for the 2x2/stride-2 max-pools.
    def col_select(w_in, w_out, off):          # [2j+off, j] = 1
        j = jnp.arange(w_out)
        return jnp.zeros((w_in, w_out), f32).at[2 * j + off, j].set(1.0)

    def row_select(c, h_in, h_out, off):       # [(ci,i), ci*h_in + 2i + off] = 1
        r = jnp.arange(c * h_out)
        cols = (r // h_out) * h_in + 2 * (r % h_out) + off
        return jnp.zeros((c * h_out, c * h_in), f32).at[r, cols].set(1.0)

    PC1 = [col_select(26, 13, 0), col_select(26, 13, 1)]                         # (26,13) x2
    PR1 = [row_select(5, 26, 13, 0), row_select(5, 26, 13, 1)]                   # (65,130) x2

    # conv2: A2[kw][co*11+i, ci*13+h] = w2[co, ci, h-i, kw]  for 0 <= h-i <= 2
    S2 = jnp.stack([jnp.eye(11, 13, k=kh, dtype=f32) for kh in range(3)])        # (3,11,13)
    A2 = [jnp.einsum("ock,kih->oich", w2[:, :, :, kw].astype(f32), S2).reshape(110, 65)
          for kw in range(3)]
    b2c = jnp.repeat(b2.astype(f32), 11)[:, None]                                # (110, 1)

    PC2 = [col_select(11, 5, 0), col_select(11, 5, 1)]                            # (11,5) x2
    PR2 = [row_select(10, 11, 5, 0), row_select(10, 11, 5, 1)]                    # (50,110) x2

    # fcl: flat index c*25 + i*5 + j == (c*5+i)*5 + j, so wf.reshape(10,50,5)
    # already matches the (C*H, W) = (50, 5) layout of the last pooled activation.
    WF = wf.astype(f32).reshape(10, 50, 5).transpose(2, 0, 1)                     # (5,10,50)
    bfc = bf.astype(f32)[:, None]                                                 # (10, 1)

    mats = {
        "A1_0": A1[0], "A1_1": A1[1], "A1_2": A1[2], "b1c": b1c,
        "PR1_0": PR1[0], "PR1_1": PR1[1], "PC1_0": PC1[0], "PC1_1": PC1[1],
        "A2_0": A2[0], "A2_1": A2[1], "A2_2": A2[2], "b2c": b2c,
        "PR2_0": PR2[0], "PR2_1": PR2[1], "PC2_0": PC2[0], "PC2_1": PC2[1],
        "WF_0": WF[0], "WF_1": WF[1], "WF_2": WF[2], "WF_3": WF[3], "WF_4": WF[4],
        "bfc": bfc,
    }

    # Pack everything into one 8-row-aligned slab -> pallas_call takes only 2 operands.
    w_packed = jnp.zeros((_W_ROWS, _W_COLS), f32)
    for name, (off, r, c) in _LAYOUT.items():
        m = mats[name]
        assert m.shape == (r, c), (name, m.shape, (r, c))
        w_packed = w_packed.at[off:off + r, 0:c].set(m)
    return w_packed


# ----------------------------------------------------------------------------
# Pure-JAX reference (for correctness checking)
# ----------------------------------------------------------------------------
def reference_forward(x, params):
    w1, b1, w2, b2, wf, bf = params
    dn = ("NCHW", "OIHW", "NCHW")
    y = lax.conv_general_dilated(x[None], w1, (1, 1), "VALID", dimension_numbers=dn)
    y = jnp.maximum(y + b1[None, :, None, None], 0.0)
    y = lax.reduce_window(y, -jnp.inf, lax.max, (1, 1, 2, 2), (1, 1, 2, 2), "VALID")
    y = lax.conv_general_dilated(y, w2, (1, 1), "VALID", dimension_numbers=dn)
    y = y + b2[None, :, None, None]
    y = lax.reduce_window(y, -jnp.inf, lax.max, (1, 1, 2, 2), (1, 1, 2, 2), "VALID")
    y = jnp.maximum(y, 0.0)
    flat = y.reshape(1, -1)
    return flat @ wf.T + bf[None]


# ----------------------------------------------------------------------------
# Deterministic parameter init (shapes from the module's __init__)
# ----------------------------------------------------------------------------
def init_params(key):
    k = jax.random.split(key, 6)

    def uni(k_, shape, fan_in):
        bound = 1.0 / jnp.sqrt(fan_in)
        return jax.random.uniform(k_, shape, jnp.float32, -bound, bound)

    w1 = uni(k[0], (5, 1, 3, 3), 1 * 9)
    b1 = uni(k[1], (5,), 1 * 9)
    w2 = uni(k[2], (10, 5, 3, 3), 5 * 9)
    b2 = uni(k[3], (10,), 5 * 9)
    wf = uni(k[4], (10, 250), 250)
    bf = uni(k[5], (10,), 250)
    return (w1, b1, w2, b2, wf, bf)


if __name__ == "__main__":
    key = jax.random.PRNGKey(0)
    kx, kp = jax.random.split(key)

    # TODO(synk): transforms.ToTensor() (PIL image -> float tensor in [0,1]) has no
    # Pallas equivalent; the input is supplied already converted, shape (1, 28, 28).
    x = jax.random.uniform(kx, (1, 28, 28), jnp.float32)
    params = init_params(kp)

    w_packed = preprocess_params(params)      # one-time repack, off the hot path
    fwd = jax.jit(my_first_cnn_forward)
    out = jax.block_until_ready(fwd(x, w_packed))

    ref = reference_forward(x, params)
    assert out.shape == (1, 10), out.shape
    assert jnp.allclose(out, ref, atol=5e-4, rtol=5e-4), (out, ref)

    print("KERNEL_OK")
</pallas_src>

<mosaic_0001>
module attributes {stable_mosaic.version = 11 : i64} {
  func.func @_fused_cnn_kernel(%arg0: memref<28x28xf32, #tpu.memory_space<vmem>>, %arg1: memref<1440x130xf32, #tpu.memory_space<vmem>>, %arg2: memref<10x1xf32, #tpu.memory_space<vmem>>) attributes {dimension_semantics = [], scalar_prefetch = 0 : i64, scratch_operands = 0 : i64, tpu.core_type = #tpu.core_type<tc>} {
    %c0 = arith.constant 0 : index
    %c0_0 = arith.constant 0 : index
    %0 = vector.load %arg1[%c0, %c0_0] : memref<1440x130xf32, #tpu.memory_space<vmem>>, vector<130x28xf32>
    %c0_1 = arith.constant 0 : index
    %c0_2 = arith.constant 0 : index
    %1 = vector.load %arg0[%c0_1, %c0_2] : memref<28x28xf32, #tpu.memory_space<vmem>>, vector<28x26xf32>
    %cst = arith.constant dense<0.000000e+00> : vector<130x26xf32>
    %2 = tpu.matmul %0, %1, %cst {dimension_numbers = #tpu.dot_dimension_numbers<[1], [0], [0], [1], [0, 0, 1, 1], [], []>} : vector<130x28xf32>, vector<28x26xf32>, vector<130x26xf32> -> vector<130x26xf32>
    %c136 = arith.constant 136 : index
    %c0_3 = arith.constant 0 : index
    %3 = vector.load %arg1[%c136, %c0_3] : memref<1440x130xf32, #tpu.memory_space<vmem>>, vector<130x28xf32>
    %c0_4 = arith.constant 0 : index
    %c1 = arith.constant 1 : index
    %4 = vector.load %arg0[%c0_4, %c1] : memref<28x28xf32, #tpu.memory_space<vmem>>, vector<28x26xf32>
    %cst_5 = arith.constant dense<0.000000e+00> : vector<130x26xf32>
    %5 = tpu.matmul %3, %4, %cst_5 {dimension_numbers = #tpu.dot_dimension_numbers<[1], [0], [0], [1], [0, 0, 1, 1], [], []>} : vector<130x28xf32>, vector<28x26xf32>, vector<130x26xf32> -> vector<130x26xf32>
    %6 = arith.addf %2, %5 : vector<130x26xf32>
    %c272 = arith.constant 272 : index
    %c0_6 = arith.constant 0 : index
    %7 = vector.load %arg1[%c272, %c0_6] : memref<1440x130xf32, #tpu.memory_space<vmem>>, vector<130x28xf32>
    %c0_7 = arith.constant 0 : index
    %c2 = arith.constant 2 : index
    %8 = vector.load %arg0[%c0_7, %c2] : memref<28x28xf32, #tpu.memory_space<vmem>>, vector<28x26xf32>
    %cst_8 = arith.constant dense<0.000000e+00> : vector<130x26xf32>
    %9 = tpu.matmul %7, %8, %cst_8 {dimension_numbers = #tpu.dot_dimension_numbers<[1], [0], [0], [1], [0, 0, 1, 1], [], []>} : vector<130x28xf32>, vector<28x26xf32>, vector<130x26xf32> -> vector<130x26xf32>
    %10 = arith.addf %6, %9 : vector<130x26xf32>
    %c408 = arith.constant 408 : index
    %c0_9 = arith.constant 0 : index
    %11 = vector.load %arg1[%c408, %c0_9] : memref<1440x130xf32, #tpu.memory_space<vmem>>, vector<130x1xf32>
    %12 = vector.broadcast %11 : vector<130x1xf32> to vector<130x26xf32>
    %13 = arith.addf %10, %12 : vector<130x26xf32>
    %cst_10 = arith.constant 0.000000e+00 : f32
    %14 = vector.broadcast %cst_10 : f32 to vector<130x26xf32>
    %15 = arith.maximumf %13, %14 : vector<130x26xf32>
    %c688 = arith.constant 688 : index
    %c0_11 = arith.constant 0 : index
    %16 = vector.load %arg1[%c688, %c0_11] : memref<1440x130xf32, #tpu.memory_space<vmem>>, vector<26x13xf32>
    %cst_12 = arith.constant dense<0.000000e+00> : vector<130x13xf32>
    %17 = tpu.matmul %15, %16, %cst_12 {dimension_numbers = #tpu.dot_dimension_numbers<[1], [0], [0], [1], [0, 0, 1, 1], [], []>} : vector<130x26xf32>, vector<26x13xf32>, vector<130x13xf32> -> vector<130x13xf32>
    %c720 = arith.constant 720 : index
    %c0_13 = arith.constant 0 : index
    %18 = vector.load %arg1[%c720, %c0_13] : memref<1440x130xf32, #tpu.memory_space<vmem>>, vector<26x13xf32>
    %cst_14 = arith.constant dense<0.000000e+00> : vector<130x13xf32>
    %19 = tpu.matmul %15, %18, %cst_14 {dimension_numbers = #tpu.dot_dimension_numbers<[1], [0], [0], [1], [0, 0, 1, 1], [], []>} : vector<130x26xf32>, vector<26x13xf32>, vector<130x13xf32> -> vector<130x13xf32>
    %20 = arith.maximumf %17, %19 : vector<130x13xf32>
    %c544 = arith.constant 544 : index
    %c0_15 = arith.constant 0 : index
    %21 = vector.load %arg1[%c544, %c0_15] : memref<1440x130xf32, #tpu.memory_space<vmem>>, vector<65x130xf32>
    %cst_16 = arith.constant dense<0.000000e+00> : vector<65x13xf32>
    %22 = tpu.matmul %21, %20, %cst_16 {dimension_numbers = #tpu.dot_dimension_numbers<[1], [0], [0], [1], [0, 0, 1, 1], [], []>} : vector<65x130xf32>, vector<130x13xf32>, vector<65x13xf32> -> vector<65x13xf32>
    %c616 = arith.constant 616 : index
    %c0_17 = arith.constant 0 : index
    %23 = vector.load %arg1[%c616, %c0_17] : memref<1440x130xf32, #tpu.memory_space<vmem>>, vector<65x130xf32>
    %cst_18 = arith.constant dense<0.000000e+00> : vector<65x13xf32>
    %24 = tpu.matmul %23, %20, %cst_18 {dimension_numbers = #tpu.dot_dimension_numbers<[1], [0], [0], [1], [0, 0, 1, 1], [], []>} : vector<65x130xf32>, vector<130x13xf32>, vector<65x13xf32> -> vector<65x13xf32>
    %25 = arith.maximumf %22, %24 : vector<65x13xf32>
    %c752 = arith.constant 752 : index
    %c0_19 = arith.constant 0 : index
    %26 = vector.load %arg1[%c752, %c0_19] : memref<1440x130xf32, #tpu.memory_space<vmem>>, vector<110x65xf32>
    %27 = vector.extract_strided_slice %25 {offsets = [0, 0], sizes = [65, 11], strides = [1, 1]} : vector<65x13xf32> to vector<65x11xf32>
    %cst_20 = arith.constant dense<0.000000e+00> : vector<110x11xf32>
    %28 = tpu.matmul %26, %27, %cst_20 {dimension_numbers = #tpu.dot_dimension_numbers<[1], [0], [0], [1], [0, 0, 1, 1], [], []>} : vector<110x65xf32>, vector<65x11xf32>, vector<110x11xf32> -> vector<110x11xf32>
    %c864 = arith.constant 864 : index
    %c0_21 = arith.constant 0 : index
    %29 = vector.load %arg1[%c864, %c0_21] : memref<1440x130xf32, #tpu.memory_space<vmem>>, vector<110x65xf32>
    %30 = vector.extract_strided_slice %25 {offsets = [0, 1], sizes = [65, 11], strides = [1, 1]} : vector<65x13xf32> to vector<65x11xf32>
    %cst_22 = arith.constant dense<0.000000e+00> : vector<110x11xf32>
    %31 = tpu.matmul %29, %30, %cst_22 {dimension_numbers = #tpu.dot_dimension_numbers<[1], [0], [0], [1], [0, 0, 1, 1], [], []>} : vector<110x65xf32>, vector<65x11xf32>, vector<110x11xf32> -> vector<110x11xf32>
    %32 = arith.addf %28, %31 : vector<110x11xf32>
    %c976 = arith.constant 976 : index
    %c0_23 = arith.constant 0 : index
    %33 = vector.load %arg1[%c976, %c0_23] : memref<1440x130xf32, #tpu.memory_space<vmem>>, vector<110x65xf32>
    %34 = vector.extract_strided_slice %25 {offsets = [0, 2], sizes = [65, 11], strides = [1, 1]} : vector<65x13xf32> to vector<65x11xf32>
    %cst_24 = arith.constant dense<0.000000e+00> : vector<110x11xf32>
    %35 = tpu.matmul %33, %34, %cst_24 {dimension_numbers = #tpu.dot_dimension_numbers<[1], [0], [0], [1], [0, 0, 1, 1], [], []>} : vector<110x65xf32>, vector<65x11xf32>, vector<110x11xf32> -> vector<110x11xf32>
    %36 = arith.addf %32, %35 : vector<110x11xf32>
    %c1088 = arith.constant 1088 : index
    %c0_25 = arith.constant 0 : index
    %37 = vector.load %arg1[%c1088, %c0_25] : memref<1440x130xf32, #tpu.memory_space<vmem>>, vector<110x1xf32>
    %38 = vector.broadcast %37 : vector<110x1xf32> to vector<110x11xf32>
    %39 = arith.addf %36, %38 : vector<110x11xf32>
    %c1312 = arith.constant 1312 : index
    %c0_26 = arith.constant 0 : index
    %40 = vector.load %arg1[%c1312, %c0_26] : memref<1440x130xf32, #tpu.memory_space<vmem>>, vector<11x5xf32>
    %cst_27 = arith.constant dense<0.000000e+00> : vector<110x5xf32>
    %41 = tpu.matmul %39, %40, %cst_27 {dimension_numbers = #tpu.dot_dimension_numbers<[1], [0], [0], [1], [0, 0, 1, 1], [], []>} : vector<110x11xf32>, vector<11x5xf32>, vector<110x5xf32> -> vector<110x5xf32>
    %c1328 = arith.constant 1328 : index
    %c0_28 = arith.constant 0 : index
    %42 = vector.load %arg1[%c1328, %c0_28] : memref<1440x130xf32, #tpu.memory_space<vmem>>, vector<11x5xf32>
    %cst_29 = arith.constant dense<0.000000e+00> : vector<110x5xf32>
    %43 = tpu.matmul %39, %42, %cst_29 {dimension_numbers = #tpu.dot_dimension_numbers<[1], [0], [0], [1], [0, 0, 1, 1], [], []>} : vector<110x11xf32>, vector<11x5xf32>, vector<110x5xf32> -> vector<110x5xf32>
    %44 = arith.maximumf %41, %43 : vector<110x5xf32>
    %c1200 = arith.constant 1200 : index
    %c0_30 = arith.constant 0 : index
    %45 = vector.load %arg1[%c1200, %c0_30] : memref<1440x130xf32, #tpu.memory_space<vmem>>, vector<50x110xf32>
    %cst_31 = arith.constant dense<0.000000e+00> : vector<50x5xf32>
    %46 = tpu.matmul %45, %44, %cst_31 {dimension_numbers = #tpu.dot_dimension_numbers<[1], [0], [0], [1], [0, 0, 1, 1], [], []>} : vector<50x110xf32>, vector<110x5xf32>, vector<50x5xf32> -> vector<50x5xf32>
    %c1256 = arith.constant 1256 : index
    %c0_32 = arith.constant 0 : index
    %47 = vector.load %arg1[%c1256, %c0_32] : memref<1440x130xf32, #tpu.memory_space<vmem>>, vector<50x110xf32>
    %cst_33 = arith.constant dense<0.000000e+00> : vector<50x5xf32>
    %48 = tpu.matmul %47, %44, %cst_33 {dimension_numbers = #tpu.dot_dimension_numbers<[1], [0], [0], [1], [0, 0, 1, 1], [], []>} : vector<50x110xf32>, vector<110x5xf32>, vector<50x5xf32> -> vector<50x5xf32>
    %49 = arith.maximumf %46, %48 : vector<50x5xf32>
    %cst_34 = arith.constant 0.000000e+00 : f32
    %50 = vector.broadcast %cst_34 : f32 to vector<50x5xf32>
    %51 = arith.maximumf %49, %50 : vector<50x5xf32>
    %c1424 = arith.constant 1424 : index
    %c0_35 = arith.constant 0 : index
    %52 = vector.load %arg1[%c1424, %c0_35] : memref<1440x130xf32, #tpu.memory_space<vmem>>, vector<10x1xf32>
    %c1344 = arith.constant 1344 : index
    %c0_36 = arith.constant 0 : index
    %53 = vector.load %arg1[%c1344, %c0_36] : memref<1440x130xf32, #tpu.memory_space<vmem>>, vector<10x50xf32>
    %54 = vector.extract_strided_slice %51 {offsets = [0, 0], sizes = [50, 1], strides = [1, 1]} : vector<50x5xf32> to vector<50x1xf32>
    %cst_37 = arith.constant dense<0.000000e+00> : vector<10x1xf32>
    %55 = tpu.matmul %53, %54, %cst_37 {dimension_numbers = #tpu.dot_dimension_numbers<[1], [0], [0], [1], [0, 0, 1, 1], [], []>} : vector<10x50xf32>, vector<50x1xf32>, vector<10x1xf32> -> vector<10x1xf32>
    %56 = arith.addf %52, %55 : vector<10x1xf32>
    %c1360 = arith.constant 1360 : index
    %c0_38 = arith.constant 0 : index
    %57 = vector.load %arg1[%c1360, %c0_38] : memref<1440x130xf32, #tpu.memory_space<vmem>>, vector<10x50xf32>
    %58 = vector.extract_strided_slice %51 {offsets = [0, 1], sizes = [50, 1], strides = [1, 1]} : vector<50x5xf32> to vector<50x1xf32>
    %cst_39 = arith.constant dense<0.000000e+00> : vector<10x1xf32>
    %59 = tpu.matmul %57, %58, %cst_39 {dimension_numbers = #tpu.dot_dimension_numbers<[1], [0], [0], [1], [0, 0, 1, 1], [], []>} : vector<10x50xf32>, vector<50x1xf32>, vector<10x1xf32> -> vector<10x1xf32>
    %60 = arith.addf %56, %59 : vector<10x1xf32>
    %c1376 = arith.constant 1376 : index
    %c0_40 = arith.constant 0 : index
    %61 = vector.load %arg1[%c1376, %c0_40] : memref<1440x130xf32, #tpu.memory_space<vmem>>, vector<10x50xf32>
    %62 = vector.extract_strided_slice %51 {offsets = [0, 2], sizes = [50, 1], strides = [1, 1]} : vector<50x5xf32> to vector<50x1xf32>
    %cst_41 = arith.constant dense<0.000000e+00> : vector<10x1xf32>
    %63 = tpu.matmul %61, %62, %cst_41 {dimension_numbers = #tpu.dot_dimension_numbers<[1], [0], [0], [1], [0, 0, 1, 1], [], []>} : vector<10x50xf32>, vector<50x1xf32>, vector<10x1xf32> -> vector<10x1xf32>
    %64 = arith.addf %60, %63 : vector<10x1xf32>
    %c1392 = arith.constant 1392 : index
    %c0_42 = arith.constant 0 : index
    %65 = vector.load %arg1[%c1392, %c0_42] : memref<1440x130xf32, #tpu.memory_space<vmem>>, vector<10x50xf32>
    %66 = vector.extract_strided_slice %51 {offsets = [0, 3], sizes = [50, 1], strides = [1, 1]} : vector<50x5xf32> to vector<50x1xf32>
    %cst_43 = arith.constant dense<0.000000e+00> : vector<10x1xf32>
    %67 = tpu.matmul %65, %66, %cst_43 {dimension_numbers = #tpu.dot_dimension_numbers<[1], [0], [0], [1], [0, 0, 1, 1], [], []>} : vector<10x50xf32>, vector<50x1xf32>, vector<10x1xf32> -> vector<10x1xf32>
    %68 = arith.addf %64, %67 : vector<10x1xf32>
    %c1408 = arith.constant 1408 : index
    %c0_44 = arith.constant 0 : index
    %69 = vector.load %arg1[%c1408, %c0_44] : memref<1440x130xf32, #tpu.memory_space<vmem>>, vector<10x50xf32>
    %70 = vector.extract_strided_slice %51 {offsets = [0, 4], sizes = [50, 1], strides = [1, 1]} : vector<50x5xf32> to vector<50x1xf32>
    %cst_45 = arith.constant dense<0.000000e+00> : vector<10x1xf32>
    %71 = tpu.matmul %69, %70, %cst_45 {dimension_numbers = #tpu.dot_dimension_numbers<[1], [0], [0], [1], [0, 0, 1, 1], [], []>} : vector<10x50xf32>, vector<50x1xf32>, vector<10x1xf32> -> vector<10x1xf32>
    %72 = arith.addf %68, %71 : vector<10x1xf32>
    %c0_46 = arith.constant 0 : index
    %c0_47 = arith.constant 0 : index
    %73 = vector.load %arg2[%c0_46, %c0_47] : memref<10x1xf32, #tpu.memory_space<vmem>>, vector<10x1xf32>
    tpu.vector_store %arg2[%c0_46, %c0_47], %72 {strides = array<i32>} : memref<10x1xf32, #tpu.memory_space<vmem>>, vector<10x1xf32>,
    return
  }
}

</mosaic_0001>

<bundles_post_ra>
// kernel: my_first_cnn_forward.1
= control target key start
LH: loop header
LB: loop body
LE: loop exit
PB: predicated region body
PF: predicated region fallthrough
CT: control target
= control target key end

     0   :  { %s2579_s11 = smov 126   ;;  %s2580_s12 = smov 127   ;;  %vm116_vm0 = vcmask 1043456   ;;  %v2581_v7 = vmov 0   ;;  %vm64_vm1 = vcmask 228352   ;;  %vm666_vm2 = vcmask 1041408   ;;  %s3506_s0 = inlined_call_operand.vmem [shape: f32[28,28], index: 0, kind: input, shape index: {}]   ;;  %s3507_s1 = inlined_call_operand.vmem [shape: f32[1440,130], index: 1, kind: input, shape index: {}]   ;;  %s3508_s2 = inlined_call_operand.vmem [shape: f32[10,1], index: 2, kind: output, shape index: {}]  }
   0x1   :  { %v31_v0 = vld [vmem:[%s3506_s0 + $0x18] sm:$0xf]  ;;  %v28_v1 = vld [vmem:[%s3506_s0] sm:$0xff]  ;;  %v29_v2 = vld [vmem:[%s3506_s0 + $0x8] sm:$0xff]  ;;  %2477 = vset.pattern.permute.xlu1 %v2581_v7  ;;  %2476 = vset.pattern.permute.xlu0 %v2581_v7  ;;  %vm614_vm3 = vcmask 211968   ;;  %vm848_vm4 = vcmask 15360  }
   0x2   :  { %331 = vrot.lane.b32.xlu0 %v31_v0, %s2579_s11  ;;  %59 = vrot.lane.b32.xlu1 %v31_v0, %s2580_s12  ;;  %v30_v3 = vld [vmem:[%s3506_s0 + $0x10] sm:$0xff]  ;;  %v475_v5 = vld [vmem:[%s3507_s1 + $0x340] sm:$0xff]  ;;  %vm1215_vm5 = vcmask 1040384   ;;  %vm1172_vm6 = vcmask 531456   ;;  %vm1680_vm7 = vcmask 1042432   ;;  %vm1637_vm8 = vcmask 89088  }
   0x3   :  { %325 = vrot.lane.b32.xlu2 %v28_v1, %s2579_s11  ;;  %v2466_v4 = vpack.i.bf16 %v29_v2, %v30_v3  ;;  %v474_v6 = vld [vmem:[%s3507_s1 + $0x330] sm:$0xff]  ;;  %2263 = vmatpush.msk.msra.mxu1 %vm116_vm0, %v31_v0  ;;  %v477_v8 = vld [vmem:[%s3507_s1 + $0x360] sm:$0xff]  ;;  %vm1850_vm9 = vcmask 1045504   ;;  %vm1828_vm10 = vcmask 900096   ;;  %s2582_s13 = smov 125   ;;  %s2583_s14 = smov 124  }
   0x4   :  { %2478 = vset.pattern.permute.xlu2 %v2581_v7  ;;  %v479_v9 = vld [vmem:[%s3507_s1 + $0x380] sm:$0xff]  ;;  %v480_v10 = vld [vmem:[%s3507_s1 + $0x390] sm:$0xff]  ;;  %vm1976_vm11 = vcmask 408576   ;;  %vm2237_vm12 = vcmask 7168   ;;  %vm2239_vm13 = vcmask 1024  }
   0x5   :  { %253 = vmatpush.msra.mxu1 %v30_v3  ;;  %v482_v11 = vld [vmem:[%s3507_s1 + $0x3b0] sm:$0xff]  ;;  %v11_v12 = vld [vmem:[%s3507_s1] sm:$0xff] }
   0x6   :  { %v483_v13 = vld [vmem:[%s3507_s1 + $0x3c0] sm:$0xff]  ;;  %v12_v15 = vld [vmem:[%s3507_s1 + $0x10] sm:$0xff] }
   0x7   :  { %254 = vmatpush.msra.mxu1 %v29_v2  ;;  %v485_v14 = vld [vmem:[%s3507_s1 + $0x3e0] sm:$0xff]  ;;  %v486_v18 = vld [vmem:[%s3507_s1 + $0x3f0] sm:$0xff] }
   0x8   :  { %v488_v19 = vld [vmem:[%s3507_s1 + $0x410] sm:$0xff]  ;;  %v13_v21 = vld [vmem:[%s3507_s1 + $0x20] sm:$0xff] }
   0x9   :  { %255 = vmatpush.msra.mxu1 %v28_v1  ;;  %v476_v20 = vld [vmem:[%s3507_s1 + $0x350] sm:$0xff]  ;;  %v489_v29 = vld [vmem:[%s3507_s1 + $0x420] sm:$0xff] }
   0xa   :  { %2467 = vrot.lane.b32.xlu0 %v2466_v4, %s2579_s11  ;;  %2472 = vrot.lane.b32.xlu1 %v2466_v4, %s2580_s12  ;;  %v478_v25 = vld [vmem:[%s3507_s1 + $0x370] sm:$0xff]  ;;  %v308_v33 = vld [vmem:[%s3507_s1 + $0x220] sm:$0xff] }
   0xb   :  { %53 = vrot.lane.b32.xlu2 %v28_v1, %s2580_s12  ;;  %2264 = vmatmul.msk.f32.vlgmr.msra.gmra.mxu1 %vm64_vm1, %v11_v12  ;;  %v14_v30 = vld [vmem:[%s3507_s1 + $0x30] sm:$0xff]  ;;  %v481_v35 = vld [vmem:[%s3507_s1 + $0x3a0] sm:$0xff] }
   0xc   :  { %v32_v34 = vld [vmem:[%s3507_s1 + $0x110] sm:$0xff]  ;;  %v15_v36 = vld [vmem:[%s3507_s1 + $0x40] sm:$0xff] }
   0xd   :  { %v309_v37 = vld [vmem:[%s3507_s1 + $0x230] sm:$0xff]  ;;  %v33_v38 = vld [vmem:[%s3507_s1 + $0x120] sm:$0xff] }
   0xe   :  { %v484_v39 = vld [vmem:[%s3507_s1 + $0x3d0] sm:$0xff]  ;;  %v310_v41 = vld [vmem:[%s3507_s1 + $0x240] sm:$0xff] }
   0xf   :  { %v16_v40 = vld [vmem:[%s3507_s1 + $0x50] sm:$0xff]  ;;  %v487_v43 = vld [vmem:[%s3507_s1 + $0x400] sm:$0xff] }
  0x10   :  { %v34_v42 = vld [vmem:[%s3507_s1 + $0x130] sm:$0xff]  ;;  %v17_v44 = vld [vmem:[%s3507_s1 + $0x60] sm:$0xff] }
  0x11   :  { %v311_v45 = vld [vmem:[%s3507_s1 + $0x250] sm:$0xff]  ;;  %v35_v46 = vld [vmem:[%s3507_s1 + $0x140] sm:$0xff] }
  0x12   :  { %498 = vperm.xlu1 %2477, %v475_v5   ;;  %493 = vperm.xlu0 %2476, %v474_v6   ;;  %v490_v47 = vld [vmem:[%s3507_s1 + $0x430] sm:$0x3]  ;;  %v312_v49 = vld [vmem:[%s3507_s1 + $0x260] sm:$0xff] }
  0x13   :  { %2265 = vmatmul.msk.f32.gmra.mxu1 %vm64_vm1, %v12_v15  ;;  %503 = vperm.xlu2 %2478, %v476_v20   ;;  %v18_v48 = vld [vmem:[%s3507_s1 + $0x70] sm:$0xff]  ;;  %v19_v51 = vld [vmem:[%s3507_s1 + $0x80] sm:$0xff] }
  0x14   :  { %v36_v50 = vld [vmem:[%s3507_s1 + $0x150] sm:$0xff]  ;;  %v37_v53 = vld [vmem:[%s3507_s1 + $0x160] sm:$0xff] }
  0x15   :  { %v313_v52 = vld [vmem:[%s3507_s1 + $0x270] sm:$0xff]  ;;  %v314_v55 = vld [vmem:[%s3507_s1 + $0x280] sm:$0xff] }
  0x16   :  { %v20_v54 = vld [vmem:[%s3507_s1 + $0x90] sm:$0xff]  ;;  %v21_v57 = vld [vmem:[%s3507_s1 + $0xa0] sm:$0xff] }
  0x17   :  { %v38_v56 = vld [vmem:[%s3507_s1 + $0x170] sm:$0xff]  ;;  %v39_v59 = vld [vmem:[%s3507_s1 + $0x180] sm:$0xff] }
  0x18   :  { %v315_v58 = vld [vmem:[%s3507_s1 + $0x290] sm:$0xff]  ;;  %v316_v61 = vld [vmem:[%s3507_s1 + $0x2a0] sm:$0xff] }
  0x19   :  { %v22_v60 = vld [vmem:[%s3507_s1 + $0xb0] sm:$0xff]  ;;  %v23_v63 = vld [vmem:[%s3507_s1 + $0xc0] sm:$0xff] }
  0x1a   :  { %508 = vperm.xlu1 %2477, %v477_v8   ;;  %518 = vperm.xlu0 %2476, %v479_v9   ;;  %v40_v62 = vld [vmem:[%s3507_s1 + $0x190] sm:$0xff]  ;;  %v41_v1 = vld [vmem:[%s3507_s1 + $0x1a0] sm:$0xff] }
  0x1b   :  { %2266 = vmatmul.msk.f32.gmra.mxu1 %vm64_vm1, %v13_v21  ;;  %513 = vperm.xlu2 %2478, %v478_v25   ;;  %v317_v0 = vld [vmem:[%s3507_s1 + $0x2b0] sm:$0xff]  ;;  %v318_v3 = vld [vmem:[%s3507_s1 + $0x2c0] sm:$0xff] }
  0x1c   :  { %v24_v2 = vld [vmem:[%s3507_s1 + $0xd0] sm:$0xff]  ;;  %v25_v5 = vld [vmem:[%s3507_s1 + $0xe0] sm:$0xff] }
  0x1d   :  { %v42_v4 = vld [vmem:[%s3507_s1 + $0x1b0] sm:$0xff]  ;;  %v43_v7 = vld [vmem:[%s3507_s1 + $0x1c0] sm:$0xff] }
  0x1e   :  { %v319_v6 = vld [vmem:[%s3507_s1 + $0x2d0] sm:$0xff]  ;;  %v612_v15 = vld [vmem:[%s3507_s1 + $0x580] sm:$0xff] }
  0x1f   :  { %v741_v8 = vld [vmem:[%s3507_s1 + $0x5d0] sm:$0x3]  ;;  %v610_v21 = vld [vmem:[%s3507_s1 + $0x560] sm:$0xff] }
  0x20   :  { %v26_v9 = vld [vmem:[%s3507_s1 + $0xf0] sm:$0xff] }
  0x21   :  { %v739_v20 = vld [vmem:[%s3507_s1 + $0x5b0] sm:$0xff] }
  0x22   :  { %523 = vperm.xlu1 %2477, %v480_v10   ;;  %533 = vperm.xlu0 %2476, %v482_v11   ;;  %v320_v10 = vld [vmem:[%s3507_s1 + $0x2e0] sm:$0xff]  ;;  %v44_v11 = vld [vmem:[%s3507_s1 + $0x1d0] sm:$0xff] }
  0x23   :  { %2267 = vmatmul.msk.f32.gmra.mxu1 %vm64_vm1, %v14_v30  ;;  %528 = vperm.xlu2 %2478, %v481_v35   ;;  %v46_v25 = vld [vmem:[%s3507_s1 + $0x1f0] sm:$0xff] }
  0x2a   :  { %538 = vperm.xlu1 %2477, %v483_v13   ;;  %548 = vperm.xlu0 %2476, %v485_v14   ;;  %v613_v13 = vld [vmem:[%s3507_s1 + $0x590] sm:$0x3]  ;;  %v27_v14 = vld [vmem:[%s3507_s1 + $0x100] sm:$0x3] }
  0x2b   :  { %2268 = vmatmul.msk.f32.gmra.mxu1 %vm64_vm1, %v15_v36  ;;  %543 = vperm.xlu2 %2478, %v484_v39  }
  0x2c   :  { %2299 = vmatpush.msk.msra.mxu3 %vm666_vm2, %v613_v13 }
  0x2e   :  { %683 = vmatpush.msra.mxu3 %v612_v15 }
  0x32   :  { %553 = vperm.xlu1 %2477, %v486_v18   ;;  %563 = vperm.xlu0 %2476, %v488_v19   ;;  %v45_v18 = vld [vmem:[%s3507_s1 + $0x1e0] sm:$0xff]  ;;  %v611_v19 = vld [vmem:[%s3507_s1 + $0x570] sm:$0xff] }
  0x33   :  { %2269 = vmatmul.msk.f32.gmra.mxu1 %vm64_vm1, %v16_v40  ;;  %558 = vperm.xlu2 %2478, %v487_v43  }
  0x34   :  { %684 = vmatpush.msra.mxu3 %v611_v19 }
  0x36   :  { %685 = vmatpush.msra.mxu3 %v610_v21 }
  0x3a   :  { %568 = vperm.xlu1 %2477, %v489_v29  }
  0x3b   :  { %2270 = vmatmul.msk.f32.gmra.mxu1 %vm64_vm1, %v17_v44  ;;  %573 = vperm.xlu2 %2478, %v490_v47  }
  0x43   :  { %2271 = vmatmul.msk.f32.gmra.mxu1 %vm64_vm1, %v18_v48 }
  0x4b   :  { %2272 = vmatmul.msk.f32.gmra.mxu1 %vm64_vm1, %v19_v51 }
  0x53   :  { %2273 = vmatmul.msk.f32.gmra.mxu1 %vm64_vm1, %v20_v54 }
  0x5b   :  { %2274 = vmatmul.msk.f32.gmra.mxu1 %vm64_vm1, %v21_v57 }
  0x5d   :  { %v326_v22 = vpop.permute.xlu2 %325 }
  0x63   :  { %2275 = vmatmul.msk.f32.gmra.mxu1 %vm64_vm1, %v22_v60 }
  0x65   :  { %v54_v32 = vpop.permute.xlu2 %53 }
  0x6b   :  { %2276 = vmatmul.msk.f32.gmra.mxu1 %vm64_vm1, %v23_v63 }
  0x73   :  { %2277 = vmatmul.msk.f32.gmra.mxu1 %vm64_vm1, %v24_v2 }
  0x74   :  { %v332_v16 = vpop.permute.xlu0 %331  ;;  %v60_v17 = vpop.permute.xlu1 %59 }
  0x75   :  { %2281 = vmatpush.msk.msra.mxu2 %vm116_vm0, %v332_v16  ;;  %2245 = vmatpush.msk.msra.mxu0 %vm116_vm0, %v60_v17  ;;  %v740_v16 = vld [vmem:[%s3507_s1 + $0x5c0] sm:$0xff]  ;;  %v321_v17 = vld [vmem:[%s3507_s1 + $0x2f0] sm:$0xff] }
  0x7b   :  { %2278 = vmatmul.msk.f32.gmra.mxu1 %vm64_vm1, %v25_v5 }
  0x7c   :  { %v2468_v23 = vpop.permute.xlu0 %2467  ;;  %v2473_v24 = vpop.permute.xlu1 %2472 }
  0x7d   :  { %v2469_v26 = vunpack.i.l.bf16 %v2468_v23  ;;  %v2474_v27 = vunpack.i.l.bf16 %v2473_v24  ;;  %v2475_v28 = vunpack.i.h.bf16 %v2473_v24  ;;  %v2470_v31 = vunpack.i.h.bf16 %v2468_v23  ;;  %v322_v24 = vld [vmem:[%s3507_s1 + $0x300] sm:$0xff] }
  0x7f   :  { %402 = vmatpush.msra.mxu2 %v2469_v26  ;;  %132 = vmatpush.msra.mxu0 %v2474_v27  ;;  %v323_v27 = vld [vmem:[%s3507_s1 + $0x310] sm:$0xff] }
  0x81   :  { %403 = vmatpush.msra.mxu2 %v2470_v31  ;;  %133 = vmatpush.msra.mxu0 %v2475_v28  ;;  %v47_v28 = vld [vmem:[%s3507_s1 + $0x200] sm:$0xff] }
  0x82   :  { %v324_v31 = vld [vmem:[%s3507_s1 + $0x320] sm:$0x3] }
  0x83   :  { %404 = vmatpush.msra.mxu2 %v326_v22  ;;  %134 = vmatpush.msra.mxu0 %v54_v32  ;;  %v738_v22 = vld [vmem:[%s3507_s1 + $0x5a0] sm:$0xff]  ;;  %v48_v32 = vld [vmem:[%s3507_s1 + $0x210] sm:$0x3] }
  0x84   :  { %2282 = vmatmul.msk.f32.vlgmr.msra.gmra.mxu2 %vm64_vm1, %v308_v33  ;;  %2246 = vmatmul.msk.f32.vlgmr.msra.gmra.mxu0 %vm64_vm1, %v32_v34  ;;  %v494_v35 = vpop.permute.xlu0 %493  ;;  %v499_v44 = vpop.permute.xlu1 %498 }
  0x85   :  { %2317 = vmatpush.msk.msrb.mxu0 %vm666_vm2, %v741_v8  ;;  %2279 = vmatmul.msk.f32.gmra.mxu1 %vm64_vm1, %v26_v9 }
  0x87   :  { %758 = vmatpush.msrb.mxu0 %v740_v16 }
  0x88   :  { %v257_v12 = vpop.f32.mrf.mxu1 }
  0x89   :  { %759 = vmatpush.msrb.mxu0 %v739_v20 }
  0x8b   :  { %760 = vmatpush.msrb.mxu0 %v738_v22 }
  0x8c   :  { %2283 = vmatmul.msk.f32.gmra.mxu2 %vm64_vm1, %v309_v37  ;;  %2247 = vmatmul.msk.f32.gmra.mxu0 %vm64_vm1, %v33_v38  ;;  %v509_v60 = vpop.permute.xlu1 %508 }
  0x8d   :  { %2280 = vmatmul.msk.f32.gmra.mxu1 %vm64_vm1, %v27_v14 }
  0x90   :  { %v260_v23 = vpop.f32.mrf.mxu1 }
  0x94   :  { %2284 = vmatmul.msk.f32.gmra.mxu2 %vm64_vm1, %v310_v41  ;;  %2248 = vmatmul.msk.f32.gmra.mxu0 %vm64_vm1, %v34_v42  ;;  %v524_v19 = vpop.permute.xlu1 %523 }
  0x98   :  { %v263_v26 = vpop.f32.mrf.mxu1 }
  0x9c   :  { %2285 = vmatmul.msk.f32.gmra.mxu2 %vm64_vm1, %v311_v45  ;;  %2249 = vmatmul.msk.f32.gmra.mxu0 %vm64_vm1, %v35_v46 }
  0xa0   :  { %v266_v29 = vpop.f32.mrf.mxu1 }
  0xa4   :  { %2286 = vmatmul.msk.f32.gmra.mxu2 %vm64_vm1, %v312_v49  ;;  %2250 = vmatmul.msk.f32.gmra.mxu0 %vm64_vm1, %v36_v50 }
  0xa8   :  { %v269_v38 = vpop.f32.mrf.mxu1 }
  0xac   :  { %2287 = vmatmul.msk.f32.gmra.mxu2 %vm64_vm1, %v313_v52  ;;  %2251 = vmatmul.msk.f32.gmra.mxu0 %vm64_vm1, %v37_v53  ;;  %v504_v52 = vpop.permute.xlu2 %503 }
  0xb0   :  { %v272_v47 = vpop.f32.mrf.mxu1 }
  0xb4   :  { %2288 = vmatmul.msk.f32.gmra.mxu2 %vm64_vm1, %v314_v55  ;;  %2252 = vmatmul.msk.f32.gmra.mxu0 %vm64_vm1, %v38_v56 }
  0xb8   :  { %v275_v57 = vpop.f32.mrf.mxu1 }
  0xbc   :  { %2289 = vmatmul.msk.f32.gmra.mxu2 %vm64_vm1, %v315_v58  ;;  %2253 = vmatmul.msk.f32.gmra.mxu0 %vm64_vm1, %v39_v59 }
  0xc0   :  { %v278_v2 = vpop.f32.mrf.mxu1 }
  0xc4   :  { %2290 = vmatmul.msk.f32.gmra.mxu2 %vm64_vm1, %v316_v61  ;;  %2254 = vmatmul.msk.f32.gmra.mxu0 %vm64_vm1, %v40_v62 }
  0xc8   :  { %v281_v13 = vpop.f32.mrf.mxu1 }
  0xcc   :  { %2291 = vmatmul.msk.f32.gmra.mxu2 %vm64_vm1, %v317_v0  ;;  %2255 = vmatmul.msk.f32.gmra.mxu0 %vm64_vm1, %v41_v1 }
  0xd0   :  { %v284_v22 = vpop.f32.mrf.mxu1 }
  0xd4   :  { %2292 = vmatmul.msk.f32.gmra.mxu2 %vm64_vm1, %v318_v3  ;;  %2256 = vmatmul.msk.f32.gmra.mxu0 %vm64_vm1, %v42_v4  ;;  %v514_v4 = vpop.permute.xlu2 %513 }
  0xdc   :  { %2293 = vmatmul.msk.f32.gmra.mxu2 %vm64_vm1, %v319_v6  ;;  %2257 = vmatmul.msk.f32.gmra.mxu0 %vm64_vm1, %v43_v7 }
  0xe4   :  { %2294 = vmatmul.msk.f32.gmra.mxu2 %vm64_vm1, %v320_v10  ;;  %2258 = vmatmul.msk.f32.gmra.mxu0 %vm64_vm1, %v44_v11  ;;  %v519_v10 = vpop.permute.xlu0 %518 }
  0xec   :  { %2295 = vmatmul.msk.f32.gmra.mxu2 %vm64_vm1, %v321_v17  ;;  %2259 = vmatmul.msk.f32.gmra.mxu0 %vm64_vm1, %v45_v18 }
  0xf4   :  { %2296 = vmatmul.msk.f32.gmra.mxu2 %vm64_vm1, %v322_v24  ;;  %2260 = vmatmul.msk.f32.gmra.mxu0 %vm64_vm1, %v46_v25 }
  0xfc   :  { %2297 = vmatmul.msk.f32.gmra.mxu2 %vm64_vm1, %v323_v27  ;;  %2261 = vmatmul.msk.f32.gmra.mxu0 %vm64_vm1, %v47_v28  ;;  %v529_v27 = vpop.permute.xlu2 %528 }
 0x101   :  { %v136_v30 = vpop.f32.mrf.mxu0 }
 0x102   :  { %v258_v33 = vadd.f32 %v257_v12, %v136_v30 }
 0x104   :  { %2298 = vmatmul.msk.f32.gmra.mxu2 %vm64_vm1, %v324_v31  ;;  %2262 = vmatmul.msk.f32.gmra.mxu0 %vm64_vm1, %v48_v32  ;;  %v287_v32 = vpop.f32.mrf.mxu1 }
 0x107   :  { %v406_v34 = vpop.f32.mrf.mxu2 }
 0x108   :  { %v457_v36 = vadd.f32 %v406_v34, %v258_v33 }
 0x109   :  { %v139_v37 = vpop.f32.mrf.mxu0 }
 0x10a   :  { %v576_v39 = vadd.f32 %v494_v35, %v457_v36  ;;  %v261_v40 = vadd.f32 %v260_v23, %v139_v37  ;;  %v534_v35 = vpop.permute.xlu0 %533 }
 0x10c   :  { %v593_v41 = vmax.f32 %v576_v39, 0.0 }
 0x10e   :  { %2300 = vmatmul.msk.f32.vlgmr.msra.gmra.mxu3 %vm614_vm3, %v593_v41  ;;  %2318 = vmatmul.msk.f32.vlgmr.msrb.gmra.mxu0 %vm614_vm3, %v593_v41  ;;  %v290_v41 = vpop.f32.mrf.mxu1 }
 0x10f   :  { %v409_v42 = vpop.f32.mrf.mxu2 }
 0x110   :  { %v458_v43 = vadd.f32 %v409_v42, %v261_v40 }
 0x111   :  { %v142_v45 = vpop.f32.mrf.mxu0 }
 0x112   :  { %v577_v46 = vadd.f32 %v499_v44, %v458_v43  ;;  %v264_v48 = vadd.f32 %v263_v26, %v142_v45  ;;  %v539_v43 = vpop.permute.xlu1 %538 }
 0x114   :  { %v594_v49 = vmax.f32 %v577_v46, 0.0 }
 0x116   :  { %2301 = vmatmul.msk.f32.gmra.mxu3 %vm614_vm3, %v594_v49  ;;  %2319 = vmatmul.msk.f32.gmra.mxu0 %vm614_vm3, %v594_v49  ;;  %v544_v49 = vpop.permute.xlu2 %543 }
 0x117   :  { %v412_v50 = vpop.f32.mrf.mxu2 }
 0x118   :  { %v459_v51 = vadd.f32 %v412_v50, %v264_v48 }
 0x119   :  { %v145_v53 = vpop.f32.mrf.mxu0 }
 0x11a   :  { %v578_v54 = vadd.f32 %v504_v52, %v459_v51  ;;  %v267_v55 = vadd.f32 %v266_v29, %v145_v53  ;;  %v293_v52 = vpop.f32.mrf.mxu1 }
 0x11c   :  { %v595_v56 = vmax.f32 %v578_v54, 0.0 }
 0x11e   :  { %2302 = vmatmul.msk.f32.gmra.mxu3 %vm614_vm3, %v595_v56  ;;  %2320 = vmatmul.msk.f32.gmra.mxu0 %vm614_vm3, %v595_v56 }
 0x11f   :  { %v415_v58 = vpop.f32.mrf.mxu2 }
 0x120   :  { %v460_v59 = vadd.f32 %v415_v58, %v267_v55  ;;  %v549_v58 = vpop.permute.xlu0 %548 }
 0x121   :  { %v148_v61 = vpop.f32.mrf.mxu0 }
 0x122   :  { %v579_v62 = vadd.f32 %v509_v60, %v460_v59  ;;  %v270_v63 = vadd.f32 %v269_v38, %v148_v61  ;;  %v296_v61 = vpop.f32.mrf.mxu1 }
 0x124   :  { %v596_v0 = vmax.f32 %v579_v62, 0.0 }
 0x126   :  { %2303 = vmatmul.msk.f32.gmra.mxu3 %vm614_vm3, %v596_v0  ;;  %2321 = vmatmul.msk.f32.gmra.mxu0 %vm614_vm3, %v596_v0 }
 0x127   :  { %v418_v1 = vpop.f32.mrf.mxu2 }
 0x128   :  { %v461_v3 = vadd.f32 %v418_v1, %v270_v63 }
 0x129   :  { %v151_v5 = vpop.f32.mrf.mxu0 }
 0x12a   :  { %v580_v6 = vadd.f32 %v514_v4, %v461_v3  ;;  %v273_v7 = vadd.f32 %v272_v47, %v151_v5 }
 0x12c   :  { %v597_v8 = vmax.f32 %v580_v6, 0.0 }
 0x12e   :  { %2304 = vmatmul.msk.f32.gmra.mxu3 %vm614_vm3, %v597_v8  ;;  %2322 = vmatmul.msk.f32.gmra.mxu0 %vm614_vm3, %v597_v8 }
 0x12f   :  { %v421_v9 = vpop.f32.mrf.mxu2 }
 0x130   :  { %v462_v11 = vadd.f32 %v421_v9, %v273_v7  ;;  %v299_v7 = vpop.f32.mrf.mxu1 }
 0x131   :  { %v154_v12 = vpop.f32.mrf.mxu0 }
 0x132   :  { %v581_v14 = vadd.f32 %v519_v10, %v462_v11  ;;  %v276_v15 = vadd.f32 %v275_v57, %v154_v12  ;;  %v559_v10 = vpop.permute.xlu2 %558 }
 0x134   :  { %v598_v16 = vmax.f32 %v581_v14, 0.0 }
 0x136   :  { %2305 = vmatmul.msk.f32.gmra.mxu3 %vm614_vm3, %v598_v16  ;;  %2323 = vmatmul.msk.f32.gmra.mxu0 %vm614_vm3, %v598_v16 }
 0x137   :  { %v424_v17 = vpop.f32.mrf.mxu2 }
 0x138   :  { %v463_v18 = vadd.f32 %v424_v17, %v276_v15  ;;  %v302_v16 = vpop.f32.mrf.mxu1 }
 0x139   :  { %v157_v20 = vpop.f32.mrf.mxu0 }
 0x13a   :  { %v582_v21 = vadd.f32 %v524_v19, %v463_v18  ;;  %v279_v23 = vadd.f32 %v278_v2, %v157_v20  ;;  %v554_v2 = vpop.permute.xlu1 %553  ;;  %v564_v18 = vpop.permute.xlu0 %563 }
 0x13c   :  { %v599_v24 = vmax.f32 %v582_v21, 0.0 }
 0x13e   :  { %2306 = vmatmul.msk.f32.gmra.mxu3 %vm614_vm3, %v599_v24  ;;  %2324 = vmatmul.msk.f32.gmra.mxu0 %vm614_vm3, %v599_v24 }
 0x13f   :  { %v427_v25 = vpop.f32.mrf.mxu2 }
 0x140   :  { %v464_v26 = vadd.f32 %v427_v25, %v279_v23 }
 0x141   :  { %v160_v28 = vpop.f32.mrf.mxu0 }
 0x142   :  { %v583_v29 = vadd.f32 %v529_v27, %v464_v26  ;;  %v282_v30 = vadd.f32 %v281_v13, %v160_v28  ;;  %v569_v24 = vpop.permute.xlu1 %568  ;;  %v305_v27 = vpop.f32.mrf.mxu1 }
 0x144   :  { %v600_v31 = vmax.f32 %v583_v29, 0.0 }
 0x146   :  { %2307 = vmatmul.msk.f32.gmra.mxu3 %vm614_vm3, %v600_v31  ;;  %2325 = vmatmul.msk.f32.gmra.mxu0 %vm614_vm3, %v600_v31 }
 0x147   :  { %v430_v33 = vpop.f32.mrf.mxu2 }
 0x148   :  { %v465_v34 = vadd.f32 %v430_v33, %v282_v30  ;;  %v574_v33 = vpop.permute.xlu2 %573 }
 0x149   :  { %v163_v36 = vpop.f32.mrf.mxu0 }
 0x14a   :  { %v584_v37 = vadd.f32 %v534_v35, %v465_v34  ;;  %v285_v38 = vadd.f32 %v284_v22, %v163_v36 }
 0x14c   :  { %v601_v39 = vmax.f32 %v584_v37, 0.0 }
 0x14e   :  { %2308 = vmatmul.msk.f32.gmra.mxu3 %vm614_vm3, %v601_v39  ;;  %2326 = vmatmul.msk.f32.gmra.mxu0 %vm614_vm3, %v601_v39 }
 0x14f   :  { %v433_v40 = vpop.f32.mrf.mxu2 }
 0x150   :  { %v466_v42 = vadd.f32 %v433_v40, %v285_v38 }
 0x151   :  { %v166_v44 = vpop.f32.mrf.mxu0 }
 0x152   :  { %v585_v45 = vadd.f32 %v539_v43, %v466_v42  ;;  %v288_v46 = vadd.f32 %v287_v32, %v166_v44 }
 0x154   :  { %v602_v47 = vmax.f32 %v585_v45, 0.0 }
 0x156   :  { %2309 = vmatmul.msk.f32.gmra.mxu3 %vm614_vm3, %v602_v47  ;;  %2327 = vmatmul.msk.f32.gmra.mxu0 %vm614_vm3, %v602_v47 }
 0x157   :  { %v436_v48 = vpop.f32.mrf.mxu2 }
 0x158   :  { %v467_v50 = vadd.f32 %v436_v48, %v288_v46 }
 0x159   :  { %v169_v51 = vpop.f32.mrf.mxu0 }
 0x15a   :  { %v586_v53 = vadd.f32 %v544_v49, %v467_v50  ;;  %v291_v54 = vadd.f32 %v290_v41, %v169_v51 }
 0x15c   :  { %v603_v55 = vmax.f32 %v586_v53, 0.0 }
 0x15e   :  { %2310 = vmatmul.msk.f32.gmra.mxu3 %vm614_vm3, %v603_v55  ;;  %2328 = vmatmul.msk.f32.gmra.mxu0 %vm614_vm3, %v603_v55 }
 0x15f   :  { %v439_v56 = vpop.f32.mrf.mxu2 }
 0x160   :  { %v468_v57 = vadd.f32 %v439_v56, %v291_v54 }
 0x161   :  { %v172_v59 = vpop.f32.mrf.mxu0 }
 0x162   :  { %v587_v60 = vadd.f32 %v549_v58, %v468_v57  ;;  %v294_v62 = vadd.f32 %v293_v52, %v172_v59 }
 0x164   :  { %v604_v63 = vmax.f32 %v587_v60, 0.0 }
 0x166   :  { %2311 = vmatmul.msk.f32.gmra.mxu3 %vm614_vm3, %v604_v63  ;;  %2329 = vmatmul.msk.f32.gmra.mxu0 %vm614_vm3, %v604_v63 }
 0x167   :  { %v442_v0 = vpop.f32.mrf.mxu2 }
 0x168   :  { %v469_v1 = vadd.f32 %v442_v0, %v294_v62 }
 0x169   :  { %v175_v3 = vpop.f32.mrf.mxu0 }
 0x16a   :  { %v588_v4 = vadd.f32 %v554_v2, %v469_v1  ;;  %v297_v5 = vadd.f32 %v296_v61, %v175_v3 }
 0x16c   :  { %v605_v6 = vmax.f32 %v588_v4, 0.0 }
 0x16e   :  { %2312 = vmatmul.msk.f32.gmra.mxu3 %vm614_vm3, %v605_v6  ;;  %2330 = vmatmul.msk.f32.gmra.mxu0 %vm614_vm3, %v605_v6 }
 0x16f   :  { %v445_v8 = vpop.f32.mrf.mxu2 }
 0x170   :  { %v470_v9 = vadd.f32 %v445_v8, %v297_v5 }
 0x171   :  { %v178_v11 = vpop.f32.mrf.mxu0 }
 0x172   :  { %v589_v12 = vadd.f32 %v559_v10, %v470_v9  ;;  %v300_v13 = vadd.f32 %v299_v7, %v178_v11 }
 0x174   :  { %v606_v14 = vmax.f32 %v589_v12, 0.0  ;;  %v831_v12 = vld [vmem:[%s3507_s1 + $0x448] sm:$0xff] }
 0x176   :  { %2313 = vmatmul.msk.f32.gmra.mxu3 %vm614_vm3, %v606_v14  ;;  %2331 = vmatmul.msk.f32.gmra.mxu0 %vm614_vm3, %v606_v14 }
 0x177   :  { %v448_v15 = vpop.f32.mrf.mxu2 }
 0x178   :  { %v471_v17 = vadd.f32 %v448_v15, %v300_v13 }
 0x179   :  { %v181_v19 = vpop.f32.mrf.mxu0 }
 0x17a   :  { %v590_v20 = vadd.f32 %v564_v18, %v471_v17  ;;  %v303_v21 = vadd.f32 %v302_v16, %v181_v19  ;;  %v833_v17 = vld [vmem:[%s3507_s1 + $0x458] sm:$0xff] }
 0x17c   :  { %v607_v22 = vmax.f32 %v590_v20, 0.0 }
 0x17e   :  { %2314 = vmatmul.msk.f32.gmra.mxu3 %vm614_vm3, %v607_v22  ;;  %2332 = vmatmul.msk.f32.gmra.mxu0 %vm614_vm3, %v607_v22  ;;  %v835_v22 = vld [vmem:[%s3507_s1 + $0x468] sm:$0xff] }
 0x17f   :  { %v451_v23 = vpop.f32.mrf.mxu2 }
 0x180   :  { %v472_v25 = vadd.f32 %v451_v23, %v303_v21 }
 0x181   :  { %v184_v26 = vpop.f32.mrf.mxu0 }
 0x182   :  { %v591_v28 = vadd.f32 %v569_v24, %v472_v25  ;;  %v306_v29 = vadd.f32 %v305_v27, %v184_v26  ;;  %v830_v26 = vld [vmem:[%s3507_s1 + $0x440] sm:$0xff]  ;;  %v837_v27 = vld [vmem:[%s3507_s1 + $0x478] sm:$0xff] }
 0x184   :  { %v608_v30 = vmax.f32 %v591_v28, 0.0  ;;  %v832_v28 = vld [vmem:[%s3507_s1 + $0x450] sm:$0xff] }
 0x186   :  { %2315 = vmatmul.msk.f32.gmra.mxu3 %vm614_vm3, %v608_v30  ;;  %2333 = vmatmul.msk.f32.gmra.mxu0 %vm614_vm3, %v608_v30  ;;  %v834_v30 = vld [vmem:[%s3507_s1 + $0x460] sm:$0xff] }
 0x187   :  { %v454_v31 = vpop.f32.mrf.mxu2 }
 0x188   :  { %v473_v32 = vadd.f32 %v454_v31, %v306_v29  ;;  %v839_v29 = vld [vmem:[%s3507_s1 + $0x488] sm:$0xff]  ;;  %v841_v31 = vld [vmem:[%s3507_s1 + $0x498] sm:$0xff] }
 0x18a   :  { %v592_v34 = vadd.f32 %v574_v33, %v473_v32  ;;  %v836_v32 = vld [vmem:[%s3507_s1 + $0x470] sm:$0xff]  ;;  %v843_v33 = vld [vmem:[%s3507_s1 + $0x4a8] sm:$0xff] }
 0x18b   :  { %v2933_v35 = vpop.f32.mrf.mxu0 }
 0x18c   :  { %v609_v36 = vmax.f32 %v592_v34, 0.0  ;;  %v838_v34 = vld [vmem:[%s3507_s1 + $0x480] sm:$0xff] }
 0x18e   :  { %2316 = vmatmul.msk.f32.gmra.mxu3 %vm614_vm3, %v609_v36  ;;  %2334 = vmatmul.msk.f32.gmra.mxu0 %vm614_vm3, %v609_v36  ;;  %v967_v36 = vld [vmem:[%s3507_s1 + $0x4d0] sm:$0xff] }
 0x191   :  { %v2937_v37 = vpop.f32.mrf.mxu3 }
 0x192   :  { %v813_v25 = vmax.f32 %v2937_v37, %v2933_v35  ;;  %v845_v35 = vld [vmem:[%s3507_s1 + $0x4b8] sm:$0xff]  ;;  %v840_v37 = vld [vmem:[%s3507_s1 + $0x490] sm:$0xff] }
 0x193   :  { %v2939_v38 = vpop.f32.mrf.mxu0 }
 0x199   :  { %v2941_v39 = vpop.f32.mrf.mxu3 }
 0x19a   :  { %v814_v24 = vmax.f32 %v2941_v39, %v2939_v38  ;;  %v847_v38 = vld [vmem:[%s3507_s1 + $0x4c8] sm:$0x1]  ;;  %v969_v39 = vld [vmem:[%s3507_s1 + $0x4e0] sm:$0xff] }
 0x19b   :  { %v2943_v40 = vpop.f32.mrf.mxu0 }
 0x1a1   :  { %v2945_v41 = vpop.f32.mrf.mxu3 }
 0x1a2   :  { %v815_v23 = vmax.f32 %v2945_v41, %v2943_v40  ;;  %v842_v40 = vld [vmem:[%s3507_s1 + $0x4a0] sm:$0xff]  ;;  %v971_v41 = vld [vmem:[%s3507_s1 + $0x4f0] sm:$0xff] }
 0x1a3   :  { %v2947_v42 = vpop.f32.mrf.mxu0 }
 0x1a9   :  { %v2949_v43 = vpop.f32.mrf.mxu3 }
 0x1aa   :  { %v816_v21 = vmax.f32 %v2949_v43, %v2947_v42  ;;  %v844_v42 = vld [vmem:[%s3507_s1 + $0x4b0] sm:$0xff]  ;;  %v973_v43 = vld [vmem:[%s3507_s1 + $0x500] sm:$0xff] }
 0x1ab   :  { %v2951_v44 = vpop.f32.mrf.mxu0 }
 0x1b1   :  { %v2953_v45 = vpop.f32.mrf.mxu3 }
 0x1b2   :  { %v817_v20 = vmax.f32 %v2953_v45, %v2951_v44  ;;  %v846_v44 = vld [vmem:[%s3507_s1 + $0x4c0] sm:$0x1]  ;;  %v975_v45 = vld [vmem:[%s3507_s1 + $0x510] sm:$0xff] }
 0x1b3   :  { %v777_v46 = vpop.f32.mrf.mxu0 }
 0x1b9   :  { %v702_v47 = vpop.f32.mrf.mxu3 }
 0x1ba   :  { %v818_v19 = vmax.f32 %v702_v47, %v777_v46  ;;  %v968_v46 = vld [vmem:[%s3507_s1 + $0x4d8] sm:$0xff]  ;;  %v977_v47 = vld [vmem:[%s3507_s1 + $0x520] sm:$0xff] }
 0x1bb   :  { %v780_v48 = vpop.f32.mrf.mxu0 }
 0x1c1   :  { %v705_v49 = vpop.f32.mrf.mxu3 }
 0x1c2   :  { %v819_v18 = vmax.f32 %v705_v49, %v780_v48  ;;  %v970_v48 = vld [vmem:[%s3507_s1 + $0x4e8] sm:$0xff]  ;;  %v979_v49 = vld [vmem:[%s3507_s1 + $0x530] sm:$0xff] }
 0x1c3   :  { %v783_v50 = vpop.f32.mrf.mxu0 }
 0x1c9   :  { %v708_v51 = vpop.f32.mrf.mxu3 }
 0x1ca   :  { %v820_v16 = vmax.f32 %v708_v51, %v783_v50  ;;  %v972_v50 = vld [vmem:[%s3507_s1 + $0x4f8] sm:$0xff]  ;;  %v981_v51 = vld [vmem:[%s3507_s1 + $0x540] sm:$0xff] }
 0x1cb   :  { %v786_v52 = vpop.f32.mrf.mxu0 }
 0x1d1   :  { %v711_v53 = vpop.f32.mrf.mxu3 }
 0x1d2   :  { %v821_v15 = vmax.f32 %v711_v53, %v786_v52  ;;  %v974_v52 = vld [vmem:[%s3507_s1 + $0x508] sm:$0xff]  ;;  %v983_v53 = vld [vmem:[%s3507_s1 + $0x550] sm:$0x1] }
 0x1d3   :  { %v789_v54 = vpop.f32.mrf.mxu0 }
 0x1d9   :  { %v714_v55 = vpop.f32.mrf.mxu3 }
 0x1da   :  { %v822_v14 = vmax.f32 %v714_v55, %v789_v54  ;;  %v976_v54 = vld [vmem:[%s3507_s1 + $0x518] sm:$0xff]  ;;  %v978_v55 = vld [vmem:[%s3507_s1 + $0x528] sm:$0xff] }
 0x1db   :  { %v792_v56 = vpop.f32.mrf.mxu0 }
 0x1e1   :  { %v717_v57 = vpop.f32.mrf.mxu3 }
 0x1e2   :  { %v823_v13 = vmax.f32 %v717_v57, %v792_v56  ;;  %v980_v56 = vld [vmem:[%s3507_s1 + $0x538] sm:$0xff] }
 0x1e3   :  { %v795_v58 = vpop.f32.mrf.mxu0 }
 0x1e9   :  { %v720_v59 = vpop.f32.mrf.mxu3 }
 0x1ea   :  { %v824_v11 = vmax.f32 %v720_v59, %v795_v58  ;;  %v982_v58 = vld [vmem:[%s3507_s1 + $0x548] sm:$0xff] }
 0x1eb   :  { %v798_v60 = vpop.f32.mrf.mxu0 }
 0x1f1   :  { %v723_v61 = vpop.f32.mrf.mxu3 }
 0x1f2   :  { %v825_v7 = vmax.f32 %v723_v61, %v798_v60  ;;  %v984_v60 = vld [vmem:[%s3507_s1 + $0x558] sm:$0x1] }
 0x1f3   :  { %v801_v62 = vpop.f32.mrf.mxu0 }
 0x1f9   :  { %v726_v63 = vpop.f32.mrf.mxu3 }
 0x1fa   :  { %v826_v6 = vmax.f32 %v726_v63, %v801_v62 }
 0x1fb   :  { %v804_v0 = vpop.f32.mrf.mxu0 }
 0x201   :  { %v729_v1 = vpop.f32.mrf.mxu3 }
 0x202   :  { %v827_v5 = vmax.f32 %v729_v1, %v804_v0 }
 0x203   :  { %v807_v2 = vpop.f32.mrf.mxu0 }
 0x209   :  { %v732_v3 = vpop.f32.mrf.mxu3 }
 0x20a   :  { %v828_v4 = vmax.f32 %v732_v3, %v807_v2 }
 0x20b   :  { %v810_v8 = vpop.f32.mrf.mxu0 }
 0x20c   :  { %879 = vmatpush.msrb.mxu1 %v828_v4  ;;  %1012 = vmatpush.msrb.mxu3 %v828_v4 }
 0x20e   :  { %880 = vmatpush.msrb.mxu1 %v827_v5  ;;  %1013 = vmatpush.msrb.mxu3 %v827_v5 }
 0x210   :  { %881 = vmatpush.msrb.mxu1 %v826_v6  ;;  %1014 = vmatpush.msrb.mxu3 %v826_v6 }
 0x211   :  { %v735_v9 = vpop.f32.mrf.mxu3 }
 0x212   :  { %v829_v10 = vmax.f32 %v735_v9, %v810_v8  ;;  %882 = vmatpush.msrb.mxu1 %v825_v7  ;;  %1015 = vmatpush.msrb.mxu3 %v825_v7 }
 0x214   :  { %883 = vmatpush.msrb.mxu1 %v824_v11  ;;  %2335 = vmatpush.msk.msrb.mxu2 %vm666_vm2, %v829_v10 }
 0x215   :  { %1016 = vmatpush.msrb.mxu3 %v824_v11  ;;  %2336 = vmatmul.msk.f32.vlgmr.msrb.gmra.mxu2 %vm848_vm4, %v831_v12 }
 0x216   :  { %884 = vmatpush.msrb.mxu1 %v823_v13 }
 0x217   :  { %1017 = vmatpush.msrb.mxu3 %v823_v13 }
 0x218   :  { %885 = vmatpush.msrb.mxu1 %v822_v14 }
 0x219   :  { %1018 = vmatpush.msrb.mxu3 %v822_v14 }
 0x21a   :  { %886 = vmatpush.msrb.mxu1 %v821_v15 }
 0x21b   :  { %1019 = vmatpush.msrb.mxu3 %v821_v15 }
 0x21c   :  { %887 = vmatpush.msrb.mxu1 %v820_v16 }
 0x21d   :  { %1020 = vmatpush.msrb.mxu3 %v820_v16  ;;  %2337 = vmatmul.msk.f32.gmra.mxu2 %vm848_vm4, %v833_v17 }
 0x21e   :  { %888 = vmatpush.msrb.mxu1 %v819_v18 }
 0x21f   :  { %1021 = vmatpush.msrb.mxu3 %v819_v18 }
 0x220   :  { %889 = vmatpush.msrb.mxu1 %v818_v19 }
 0x221   :  { %1022 = vmatpush.msrb.mxu3 %v818_v19 }
 0x222   :  { %890 = vmatpush.msrb.mxu1 %v817_v20 }
 0x223   :  { %1023 = vmatpush.msrb.mxu3 %v817_v20 }
 0x224   :  { %891 = vmatpush.msrb.mxu1 %v816_v21 }
 0x225   :  { %1024 = vmatpush.msrb.mxu3 %v816_v21  ;;  %2338 = vmatmul.msk.f32.gmra.mxu2 %vm848_vm4, %v835_v22 }
 0x226   :  { %892 = vmatpush.msrb.mxu1 %v815_v23 }
 0x227   :  { %1025 = vmatpush.msrb.mxu3 %v815_v23 }
 0x228   :  { %893 = vmatpush.msrb.mxu1 %v814_v24 }
 0x229   :  { %1026 = vmatpush.msrb.mxu3 %v814_v24 }
 0x22a   :  { %894 = vmatpush.msrb.mxu1 %v813_v25 }
 0x22b   :  { %1027 = vmatpush.msrb.mxu3 %v813_v25  ;;  %895 = vmatmul.f32.vlgmr.msrb.gmra.mxu1 %v830_v26 }
 0x22c   :  { %2345 = vmatpush.msk.msra.mxu1 %vm666_vm2, %v829_v10  ;;  %1028 = vmatmul.f32.vlgmr.msrb.gmra.mxu3 %v967_v36 }
 0x22d   :  { %2339 = vmatmul.msk.f32.gmra.mxu2 %vm848_vm4, %v837_v27 }
 0x233   :  { %898 = vmatmul.f32.gmra.mxu1 %v832_v28 }
 0x234   :  { %1031 = vmatmul.f32.gmra.mxu3 %v969_v39 }
 0x235   :  { %2340 = vmatmul.msk.f32.gmra.mxu2 %vm848_vm4, %v839_v29 }
 0x23b   :  { %901 = vmatmul.f32.gmra.mxu1 %v834_v30 }
 0x23c   :  { %1034 = vmatmul.f32.gmra.mxu3 %v971_v41 }
 0x23d   :  { %2341 = vmatmul.msk.f32.gmra.mxu2 %vm848_vm4, %v841_v31 }
 0x243   :  { %904 = vmatmul.f32.gmra.mxu1 %v836_v32 }
 0x244   :  { %1037 = vmatmul.f32.gmra.mxu3 %v973_v43 }
 0x245   :  { %2342 = vmatmul.msk.f32.gmra.mxu2 %vm848_vm4, %v843_v33 }
 0x24b   :  { %907 = vmatmul.f32.gmra.mxu1 %v838_v34 }
 0x24c   :  { %1040 = vmatmul.f32.gmra.mxu3 %v975_v45 }
 0x24d   :  { %2343 = vmatmul.msk.f32.gmra.mxu2 %vm848_vm4, %v845_v35 }
 0x253   :  { %910 = vmatmul.f32.gmra.mxu1 %v840_v37 }
 0x254   :  { %1043 = vmatmul.f32.gmra.mxu3 %v977_v47 }
 0x255   :  { %2344 = vmatmul.msk.f32.gmra.mxu2 %vm848_vm4, %v847_v38 }
 0x25b   :  { %913 = vmatmul.f32.gmra.mxu1 %v842_v40 }
 0x25c   :  { %1046 = vmatmul.f32.gmra.mxu3 %v979_v49 }
 0x263   :  { %916 = vmatmul.f32.gmra.mxu1 %v844_v42 }
 0x264   :  { %1049 = vmatmul.f32.gmra.mxu3 %v981_v51 }
 0x26b   :  { %919 = vmatmul.f32.gmra.mxu1 %v846_v44 }
 0x26c   :  { %1052 = vmatmul.f32.gmra.mxu3 %v983_v53 }
 0x273   :  { %2346 = vmatmul.msk.f32.vlgmr.msra.gmra.mxu1 %vm848_vm4, %v968_v46 }
 0x27b   :  { %2347 = vmatmul.msk.f32.gmra.mxu1 %vm848_vm4, %v970_v48 }
 0x283   :  { %2348 = vmatmul.msk.f32.gmra.mxu1 %vm848_vm4, %v972_v50 }
 0x28b   :  { %2349 = vmatmul.msk.f32.gmra.mxu1 %vm848_vm4, %v974_v52 }
 0x293   :  { %2350 = vmatmul.msk.f32.gmra.mxu1 %vm848_vm4, %v976_v54 }
 0x298   :  { %v3097_v2 = vpop.f32.mrf.mxu2 }
 0x29b   :  { %2351 = vmatmul.msk.f32.gmra.mxu1 %vm848_vm4, %v978_v55 }
 0x2a0   :  { %v3101_v5 = vpop.f32.mrf.mxu2 }
 0x2a3   :  { %2352 = vmatmul.msk.f32.gmra.mxu1 %vm848_vm4, %v980_v56  ;;  %v1538_v56 = vld [vmem:[%s3507_s1 + $0x890] sm:$0xff] }
 0x2a8   :  { %v3085_v57 = vpop.f32.mrf.mxu1  ;;  %v946_v9 = vpop.f32.mrf.mxu2 }
 0x2ab   :  { %2353 = vmatmul.msk.f32.gmra.mxu1 %vm848_vm4, %v982_v58 }
 0x2af   :  { %v3099_v3 = vpop.f32.mrf.mxu3 }
 0x2b0   :  { %v3091_v59 = vpop.f32.mrf.mxu1  ;;  %v949_v12 = vpop.f32.mrf.mxu2 }
 0x2b1   :  { %v944_v58 = vadd.f32 %v3101_v5, %v3091_v59  ;;  %v1541_v59 = vld [vmem:[%s3507_s1 + $0x8c0] sm:$0xff] }
 0x2b2   :  { %v1543_v5 = vld [vmem:[%s3507_s1 + $0x8e0] sm:$0xff] }
 0x2b3   :  { %2354 = vmatmul.msk.f32.gmra.mxu1 %vm848_vm4, %v984_v60 }
 0x2b7   :  { %v1032_v7 = vpop.f32.mrf.mxu3 }
 0x2b8   :  { %v902_v61 = vpop.f32.mrf.mxu1  ;;  %v952_v15 = vpop.f32.mrf.mxu2 }
 0x2b9   :  { %v947_v48 = vadd.f32 %v946_v9, %v902_v61  ;;  %v941_v61 = vadd.f32 %v3097_v2, %v3085_v57  ;;  %v1537_v57 = vld [vmem:[%s3507_s1 + $0x880] sm:$0xff]  ;;  %v1540_v2 = vld [vmem:[%s3507_s1 + $0x8b0] sm:$0xff] }
 0x2ba   :  { %v1545_v9 = vld [vmem:[%s3507_s1 + $0x900] sm:$0xff] }
 0x2bf   :  { %v1035_v10 = vpop.f32.mrf.mxu3 }
 0x2c0   :  { %v905_v62 = vpop.f32.mrf.mxu1  ;;  %v955_v18 = vpop.f32.mrf.mxu2 }
 0x2c1   :  { %v950_v45 = vadd.f32 %v949_v12, %v905_v62  ;;  %v1109_v12 = vld [vmem:[%s3507_s1 + $0x5e0] sm:$0xff] }
 0x2c7   :  { %v1038_v13 = vpop.f32.mrf.mxu3 }
 0x2c8   :  { %v908_v63 = vpop.f32.mrf.mxu1  ;;  %v958_v26 = vpop.f32.mrf.mxu2 }
 0x2c9   :  { %v953_v23 = vadd.f32 %v952_v15, %v908_v63  ;;  %v1110_v15 = vld [vmem:[%s3507_s1 + $0x5f0] sm:$0xff] }
 0x2cf   :  { %v1041_v16 = vpop.f32.mrf.mxu3 }
 0x2d0   :  { %v911_v0 = vpop.f32.mrf.mxu1  ;;  %v961_v32 = vpop.f32.mrf.mxu2 }
 0x2d1   :  { %v956_v24 = vadd.f32 %v955_v18, %v911_v0 }
 0x2d7   :  { %v1044_v20 = vpop.f32.mrf.mxu3 }
 0x2d8   :  { %v914_v1 = vpop.f32.mrf.mxu1  ;;  %v964_v43 = vpop.f32.mrf.mxu2 }
 0x2d9   :  { %v959_v36 = vadd.f32 %v958_v26, %v914_v1  ;;  %v1544_v1 = vld [vmem:[%s3507_s1 + $0x8f0] sm:$0xff] }
 0x2df   :  { %v1047_v27 = vpop.f32.mrf.mxu3 }
 0x2e0   :  { %v917_v4 = vpop.f32.mrf.mxu1 }
 0x2e1   :  { %v962_v37 = vadd.f32 %v961_v32, %v917_v4  ;;  %v1547_v4 = vld [vmem:[%s3507_s1 + $0x920] sm:$0xff]  ;;  %v1112_v32 = vld [vmem:[%s3507_s1 + $0x610] sm:$0xff] }
 0x2e7   :  { %v1050_v33 = vpop.f32.mrf.mxu3 }
 0x2e8   :  { %v920_v6 = vpop.f32.mrf.mxu1 }
 0x2e9   :  { %v965_v49 = vadd.f32 %v964_v43, %v920_v6  ;;  %v1542_v6 = vld [vmem:[%s3507_s1 + $0x8d0] sm:$0xff] }
 0x2ef   :  { %v1053_v44 = vpop.f32.mrf.mxu3 }
 0x2f0   :  { %v1073_v8 = vpop.f32.mrf.mxu1 }
 0x2f1   :  { %v1074_v60 = vadd.f32 %v1073_v8, %v3099_v3  ;;  %v1539_v3 = vld [vmem:[%s3507_s1 + $0x8a0] sm:$0xff]  ;;  %v1546_v8 = vld [vmem:[%s3507_s1 + $0x910] sm:$0xff] }
 0x2f3   :  { %v1100_v63 = vmax.f32 %v941_v61, %v1074_v60  ;;  %v1118_v60 = vld [vmem:[%s3507_s1 + $0x670] sm:$0xff]  ;;  %v1129_v61 = vld [vmem:[%s3507_s1 + $0x720] sm:$0xff] }
 0x2f8   :  { %v1076_v11 = vpop.f32.mrf.mxu1 }
 0x2f9   :  { %v1077_v55 = vadd.f32 %v1076_v11, %v1032_v7  ;;  %v1550_v7 = vld [vmem:[%s3507_s1 + $0x950] sm:$0x3f] }
 0x2fa   :  { %v1548_v11 = vld [vmem:[%s3507_s1 + $0x930] sm:$0xff] }
 0x2fb   :  { %v1101_v62 = vmax.f32 %v944_v58, %v1077_v55  ;;  %v1117_v55 = vld [vmem:[%s3507_s1 + $0x660] sm:$0xff] }
 0x2fc   :  { %v1384_v58 = vld [vmem:[%s3507_s1 + $0x7e0] sm:$0xff] }
 0x2fd   :  { %v2499_v0 = vpack.i.bf16 %v1100_v63, %v1101_v62 }
 0x300   :  { %v1079_v14 = vpop.f32.mrf.mxu1 }
 0x301   :  { %v1080_v46 = vadd.f32 %v1079_v14, %v1035_v10  ;;  %v1549_v10 = vld [vmem:[%s3507_s1 + $0x940] sm:$0xff] }
 0x303   :  { %v1102_v52 = vmax.f32 %v947_v48, %v1080_v46  ;;  %v1114_v46 = vld [vmem:[%s3507_s1 + $0x630] sm:$0xff] }
 0x304   :  { %v1381_v48 = vld [vmem:[%s3507_s1 + $0x7b0] sm:$0xff] }
 0x308   :  { %v1082_v17 = vpop.f32.mrf.mxu1 }
 0x309   :  { %v1083_v41 = vadd.f32 %v1082_v17, %v1038_v13 }
 0x30b   :  { %v1103_v50 = vmax.f32 %v950_v45, %v1083_v41  ;;  %v1380_v45 = vld [vmem:[%s3507_s1 + $0x7a0] sm:$0xff] }
 0x30d   :  { %v2509_v54 = vpack.i.bf16 %v1102_v52, %v1103_v50 }
 0x310   :  { %v1085_v19 = vpop.f32.mrf.mxu1 }
 0x311   :  { %v1086_v21 = vadd.f32 %v1085_v19, %v1041_v16 }
 0x313   :  { %v1104_v28 = vmax.f32 %v953_v23, %v1086_v21 }
 0x318   :  { %v1088_v22 = vpop.f32.mrf.mxu1 }
 0x319   :  { %v1089_v25 = vadd.f32 %v1088_v22, %v1044_v20  ;;  %v1111_v22 = vld [vmem:[%s3507_s1 + $0x600] sm:$0xff] }
 0x31b   :  { %v1105_v29 = vmax.f32 %v956_v24, %v1089_v25 }
 0x31d   :  { %v2479_v30 = vpack.i.bf16 %v1104_v28, %v1105_v29 }
 0x31f   :  { %2480 = vrot.lane.b32.xlu2 %v2479_v30, %s2580_s12 }
 0x320   :  { %v1091_v31 = vpop.f32.mrf.mxu1 }
 0x321   :  { %v1092_v34 = vadd.f32 %v1091_v31, %v1047_v27 }
 0x323   :  { %v1106_v39 = vmax.f32 %v959_v36, %v1092_v34 }
 0x328   :  { %v1094_v35 = vpop.f32.mrf.mxu1 }
 0x329   :  { %v1095_v38 = vadd.f32 %v1094_v35, %v1050_v33 }
 0x32b   :  { %v1107_v40 = vmax.f32 %v962_v37, %v1095_v38 }
 0x32d   :  { %v2484_v42 = vpack.i.bf16 %v1106_v39, %v1107_v40 }
 0x32f   :  { %2485 = vrot.lane.b32.xlu1 %v2484_v42, %s2580_s12  ;;  %2495 = vrot.lane.b32.xlu2 %v2484_v42, %s2579_s11 }
 0x330   :  { %v1097_v47 = vpop.f32.mrf.mxu1 }
 0x331   :  { %v1098_v51 = vadd.f32 %v1097_v47, %v1053_v44  ;;  %v1124_v44 = vld [vmem:[%s3507_s1 + $0x6d0] sm:$0xff]  ;;  %v1125_v47 = vld [vmem:[%s3507_s1 + $0x6e0] sm:$0xff] }
 0x333   :  { %v1108_v53 = vmax.f32 %v965_v49, %v1098_v51  ;;  %v1115_v49 = vld [vmem:[%s3507_s1 + $0x640] sm:$0xff] }
 0x334   :  { %v1382_v51 = vld [vmem:[%s3507_s1 + $0x7c0] sm:$0xff] }
 0x335   :  { %1162 = vrot.lane.b32.xlu0 %v1108_v53, %s2580_s12  ;;  %2370 = vmatpush.msk.msra.mxu3 %vm1215_vm5, %v1108_v53 }
 0x337   :  { %1329 = vmatpush.msra.mxu3 %v1107_v40  ;;  %2510 = vrot.lane.b32.xlu2 %v2509_v54, %s2579_s11  ;;  %v1113_v40 = vld [vmem:[%s3507_s1 + $0x620] sm:$0xff] }
 0x338   :  { %2490 = vrot.lane.b32.xlu1 %v2509_v54, %s2580_s12  ;;  %v1383_v54 = vld [vmem:[%s3507_s1 + $0x7d0] sm:$0xff] }
 0x339   :  { %1330 = vmatpush.msra.mxu3 %v1106_v39  ;;  %v1123_v39 = vld [vmem:[%s3507_s1 + $0x6c0] sm:$0xff] }
 0x33b   :  { %1331 = vmatpush.msra.mxu3 %v1105_v29 }
 0x33d   :  { %1410 = vrot.lane.b32.xlu0 %v1108_v53, %s2579_s11  ;;  %1332 = vmatpush.msra.mxu3 %v1104_v28  ;;  %v1127_v53 = vld [vmem:[%s3507_s1 + $0x700] sm:$0xff] }
 0x33f   :  { %1333 = vmatpush.msra.mxu3 %v1103_v50  ;;  %1558 = vperm.xlu2 %2478, %v1538_v56   ;;  %v1126_v50 = vld [vmem:[%s3507_s1 + $0x6f0] sm:$0xff] }
 0x340   :  { %2505 = vrot.lane.b32.xlu1 %v2479_v30, %s2579_s11  ;;  %v1128_v56 = vld [vmem:[%s3507_s1 + $0x710] sm:$0xff] }
 0x341   :  { %1334 = vmatpush.msra.mxu3 %v1102_v52  ;;  %v1116_v52 = vld [vmem:[%s3507_s1 + $0x650] sm:$0xff] }
 0x343   :  { %1335 = vmatpush.msra.mxu3 %v1101_v62  ;;  %v1385_v62 = vld [vmem:[%s3507_s1 + $0x7f0] sm:$0xff] }
 0x345   :  { %2500 = vrot.lane.b32.xlu0 %v2499_v0, %s2580_s12  ;;  %1336 = vmatpush.msra.mxu3 %v1100_v63  ;;  %v1119_v63 = vld [vmem:[%s3507_s1 + $0x680] sm:$0xff] }
 0x346   :  { %2371 = vmatmul.msk.f32.vlgmr.msra.gmra.mxu3 %vm1172_vm6, %v1109_v12  ;;  %v1391_v12 = vld [vmem:[%s3507_s1 + $0x850] sm:$0xff] }
 0x347   :  { %1573 = vperm.xlu2 %2478, %v1541_v59   ;;  %v1386_v59 = vld [vmem:[%s3507_s1 + $0x800] sm:$0xff] }
 0x348   :  { %1553 = vperm.xlu1 %2477, %v1537_v57   ;;  %v1120_v57 = vld [vmem:[%s3507_s1 + $0x690] sm:$0xff] }
 0x34d   :  { %2515 = vrot.lane.b32.xlu0 %v2499_v0, %s2579_s11  ;;  %v1130_v0 = vld [vmem:[%s3507_s1 + $0x730] sm:$0xff] }
 0x34e   :  { %2372 = vmatmul.msk.f32.gmra.mxu3 %vm1172_vm6, %v1110_v15 }
 0x34f   :  { %1588 = vperm.xlu2 %2478, %v1544_v1   ;;  %v1131_v1 = vld [vmem:[%s3507_s1 + $0x740] sm:$0xff] }
 0x350   :  { %1568 = vperm.xlu1 %2477, %v1540_v2   ;;  %v1387_v2 = vld [vmem:[%s3507_s1 + $0x810] sm:$0xff] }
 0x355   :  { %1563 = vperm.xlu0 %2476, %v1539_v3   ;;  %v1121_v3 = vld [vmem:[%s3507_s1 + $0x6a0] sm:$0xff] }
 0x356   :  { %2373 = vmatmul.msk.f32.gmra.mxu3 %vm1172_vm6, %v1111_v22 }
 0x357   :  { %1603 = vperm.xlu2 %2478, %v1547_v4   ;;  %v1132_v4 = vld [vmem:[%s3507_s1 + $0x750] sm:$0xff] }
 0x358   :  { %1583 = vperm.xlu1 %2477, %v1543_v5   ;;  %v1388_v5 = vld [vmem:[%s3507_s1 + $0x820] sm:$0xff] }
 0x35d   :  { %1578 = vperm.xlu0 %2476, %v1542_v6   ;;  %v1122_v6 = vld [vmem:[%s3507_s1 + $0x6b0] sm:$0x3f] }
 0x35e   :  { %2374 = vmatmul.msk.f32.gmra.mxu3 %vm1172_vm6, %v1112_v32 }
 0x35f   :  { %1618 = vperm.xlu2 %2478, %v1550_v7   ;;  %v1133_v7 = vld [vmem:[%s3507_s1 + $0x760] sm:$0xff] }
 0x360   :  { %1598 = vperm.xlu1 %2477, %v1546_v8   ;;  %v1389_v8 = vld [vmem:[%s3507_s1 + $0x830] sm:$0xff] }
 0x365   :  { %1593 = vperm.xlu0 %2476, %v1545_v9   ;;  %v1134_v9 = vld [vmem:[%s3507_s1 + $0x770] sm:$0xff] }
 0x366   :  { %2375 = vmatmul.msk.f32.gmra.mxu3 %vm1172_vm6, %v1113_v40 }
 0x368   :  { %1613 = vperm.xlu1 %2477, %v1549_v10   ;;  %v1390_v10 = vld [vmem:[%s3507_s1 + $0x840] sm:$0xff] }
 0x36d   :  { %1608 = vperm.xlu0 %2476, %v1548_v11   ;;  %v1135_v11 = vld [vmem:[%s3507_s1 + $0x780] sm:$0xff] }
 0x36e   :  { %2376 = vmatmul.msk.f32.gmra.mxu3 %vm1172_vm6, %v1114_v46 }
 0x376   :  { %2377 = vmatmul.msk.f32.gmra.mxu3 %vm1172_vm6, %v1115_v49 }
 0x379   :  { %v2481_v14 = vpop.permute.xlu2 %2480 }
 0x37a   :  { %v2482_v21 = vunpack.i.l.bf16 %v2481_v14  ;;  %v2483_v23 = vunpack.i.h.bf16 %v2481_v14  ;;  %v1392_v14 = vld [vmem:[%s3507_s1 + $0x860] sm:$0xff] }
 0x37e   :  { %2378 = vmatmul.msk.f32.gmra.mxu3 %vm1172_vm6, %v1116_v52 }
 0x386   :  { %2379 = vmatmul.msk.f32.gmra.mxu3 %vm1172_vm6, %v1117_v55 }
 0x389   :  { %v2496_v20 = vpop.permute.xlu2 %2495 }
 0x38a   :  { %v2497_v25 = vunpack.i.l.bf16 %v2496_v20  ;;  %v2498_v27 = vunpack.i.h.bf16 %v2496_v20  ;;  %v1393_v20 = vld [vmem:[%s3507_s1 + $0x870] sm:$0x3f] }
 0x38e   :  { %2380 = vmatmul.msk.f32.gmra.mxu3 %vm1172_vm6, %v1118_v60 }
 0x391   :  { %v2511_v31 = vpop.permute.xlu2 %2510 }
 0x392   :  { %v2512_v35 = vunpack.i.l.bf16 %v2511_v31  ;;  %v2513_v37 = vunpack.i.h.bf16 %v2511_v31 }
 0x396   :  { %2381 = vmatmul.msk.f32.gmra.mxu3 %vm1172_vm6, %v1119_v63 }
 0x39e   :  { %2382 = vmatmul.msk.f32.gmra.mxu3 %vm1172_vm6, %v1120_v57 }
 0x3a1   :  { %v2486_v13 = vpop.permute.xlu1 %2485 }
 0x3a2   :  { %v2487_v17 = vunpack.i.l.bf16 %v2486_v13  ;;  %v2488_v18 = vunpack.i.h.bf16 %v2486_v13  ;;  %v1136_v13 = vld [vmem:[%s3507_s1 + $0x790] sm:$0x3f] }
 0x3a6   :  { %2383 = vmatmul.msk.f32.gmra.mxu3 %vm1172_vm6, %v1121_v3 }
 0x3a7   :  { %v1163_v16 = vpop.permute.xlu0 %1162 }
 0x3a8   :  { %2355 = vmatpush.msk.msra.mxu2 %vm1215_vm5, %v1163_v16  ;;  %v1636_v16 = vld [vmem:[%s3507_s1 + $0xa50] sm:$0x7] }
 0x3a9   :  { %2400 = vmatpush.msk.msrb.mxu1 %vm1680_vm7, %v1636_v16 }
 0x3aa   :  { %v2491_v19 = vpop.permute.xlu1 %2490  ;;  %1226 = vmatpush.msra.mxu2 %v2487_v17  ;;  %v1744_v17 = vld [vmem:[%s3507_s1 + $0xa70] sm:$0x7] }
 0x3ab   :  { %v2492_v26 = vunpack.i.l.bf16 %v2491_v19  ;;  %v2493_v28 = vunpack.i.h.bf16 %v2491_v19  ;;  %v1743_v19 = vld [vmem:[%s3507_s1 + $0xa60] sm:$0xff] }
 0x3ac   :  { %1227 = vmatpush.msra.mxu2 %v2488_v18  ;;  %v1635_v18 = vld [vmem:[%s3507_s1 + $0xa40] sm:$0xff] }
 0x3ad   :  { %1699 = vmatpush.msrb.mxu1 %v1635_v18 }
 0x3ae   :  { %1228 = vmatpush.msra.mxu2 %v2482_v21  ;;  %2384 = vmatmul.msk.f32.gmra.mxu3 %vm1172_vm6, %v1122_v6 }
 0x3af   :  { %v1411_v24 = vpop.permute.xlu0 %1410 }
 0x3b0   :  { %1229 = vmatpush.msra.mxu2 %v2483_v23  ;;  %2385 = vmatpush.msk.msra.mxu0 %vm1215_vm5, %v1411_v24 }
 0x3b2   :  { %v2506_v29 = vpop.permute.xlu1 %2505  ;;  %1230 = vmatpush.msra.mxu2 %v2492_v26  ;;  %1472 = vmatpush.msra.mxu0 %v2497_v25 }
 0x3b3   :  { %v2507_v30 = vunpack.i.l.bf16 %v2506_v29  ;;  %v2508_v33 = vunpack.i.h.bf16 %v2506_v29 }
 0x3b4   :  { %1231 = vmatpush.msra.mxu2 %v2493_v28  ;;  %1473 = vmatpush.msra.mxu0 %v2498_v27 }
 0x3b6   :  { %1474 = vmatpush.msra.mxu0 %v2507_v30 }
 0x3b7   :  { %v2501_v34 = vpop.permute.xlu0 %2500 }
 0x3b8   :  { %v2502_v36 = vunpack.i.l.bf16 %v2501_v34  ;;  %1475 = vmatpush.msra.mxu0 %v2508_v33  ;;  %v2503_v38 = vunpack.i.h.bf16 %v2501_v34  ;;  %v1559_v34 = vpop.permute.xlu2 %1558 }
 0x3ba   :  { %1232 = vmatpush.msra.mxu2 %v2502_v36  ;;  %1476 = vmatpush.msra.mxu0 %v2512_v35  ;;  %v1554_v28 = vpop.permute.xlu1 %1553 }
 0x3bc   :  { %1233 = vmatpush.msra.mxu2 %v2503_v38  ;;  %1477 = vmatpush.msra.mxu0 %v2513_v37 }
 0x3bd   :  { %2356 = vmatmul.msk.f32.vlgmr.msra.gmra.mxu2 %vm1172_vm6, %v1123_v39 }
 0x3be   :  { %2415 = vmatpush.msk.msrb.mxu2 %vm1680_vm7, %v1744_v17 }
 0x3bf   :  { %v2516_v41 = vpop.permute.xlu0 %2515 }
 0x3c0   :  { %v2517_v42 = vunpack.i.l.bf16 %v2516_v41  ;;  %v2518_v43 = vunpack.i.h.bf16 %v2516_v41  ;;  %1763 = vmatpush.msrb.mxu2 %v1743_v19  ;;  %v1574_v55 = vpop.permute.xlu2 %1573 }
 0x3c2   :  { %1478 = vmatpush.msra.mxu0 %v2517_v42 }
 0x3c4   :  { %1479 = vmatpush.msra.mxu0 %v2518_v43 }
 0x3c5   :  { %2357 = vmatmul.msk.f32.gmra.mxu2 %vm1172_vm6, %v1124_v44  ;;  %2386 = vmatmul.msk.f32.vlgmr.msra.gmra.mxu0 %vm1172_vm6, %v1380_v45 }
 0x3c7   :  { %v1564_v41 = vpop.permute.xlu0 %1563 }
 0x3c9   :  { %v1338_v15 = vpop.f32.mrf.mxu3 }
 0x3cd   :  { %2358 = vmatmul.msk.f32.gmra.mxu2 %vm1172_vm6, %v1125_v47  ;;  %2387 = vmatmul.msk.f32.gmra.mxu0 %vm1172_vm6, %v1381_v48  ;;  %v1569_v48 = vpop.permute.xlu1 %1568 }
 0x3d1   :  { %v1341_v21 = vpop.f32.mrf.mxu3 }
 0x3d5   :  { %2359 = vmatmul.msk.f32.gmra.mxu2 %vm1172_vm6, %v1126_v50  ;;  %2388 = vmatmul.msk.f32.gmra.mxu0 %vm1172_vm6, %v1382_v51 }
 0x3d9   :  { %v1344_v22 = vpop.f32.mrf.mxu3 }
 0x3dd   :  { %2360 = vmatmul.msk.f32.gmra.mxu2 %vm1172_vm6, %v1127_v53  ;;  %2389 = vmatmul.msk.f32.gmra.mxu0 %vm1172_vm6, %v1383_v54 }
 0x3e1   :  { %v1347_v26 = vpop.f32.mrf.mxu3 }
 0x3e5   :  { %2361 = vmatmul.msk.f32.gmra.mxu2 %vm1172_vm6, %v1128_v56  ;;  %2390 = vmatmul.msk.f32.gmra.mxu0 %vm1172_vm6, %v1384_v58 }
 0x3e9   :  { %v1350_v35 = vpop.f32.mrf.mxu3 }
 0x3ed   :  { %2362 = vmatmul.msk.f32.gmra.mxu2 %vm1172_vm6, %v1129_v61  ;;  %2391 = vmatmul.msk.f32.gmra.mxu0 %vm1172_vm6, %v1385_v62 }
 0x3f1   :  { %v1353_v43 = vpop.f32.mrf.mxu3 }
 0x3f5   :  { %2363 = vmatmul.msk.f32.gmra.mxu2 %vm1172_vm6, %v1130_v0  ;;  %2392 = vmatmul.msk.f32.gmra.mxu0 %vm1172_vm6, %v1386_v59  ;;  %v1579_v0 = vpop.permute.xlu0 %1578 }
 0x3f9   :  { %v1356_v51 = vpop.f32.mrf.mxu3 }
 0x3fd   :  { %2364 = vmatmul.msk.f32.gmra.mxu2 %vm1172_vm6, %v1131_v1  ;;  %2393 = vmatmul.msk.f32.gmra.mxu0 %vm1172_vm6, %v1387_v2  ;;  %v1594_v18 = vpop.permute.xlu0 %1593 }
 0x401   :  { %v1359_v62 = vpop.f32.mrf.mxu3 }
 0x405   :  { %2365 = vmatmul.msk.f32.gmra.mxu2 %vm1172_vm6, %v1132_v4  ;;  %2394 = vmatmul.msk.f32.gmra.mxu0 %vm1172_vm6, %v1388_v5  ;;  %v1584_v4 = vpop.permute.xlu1 %1583 }
 0x409   :  { %v1362_v5 = vpop.f32.mrf.mxu3 }
 0x40d   :  { %2366 = vmatmul.msk.f32.gmra.mxu2 %vm1172_vm6, %v1133_v7  ;;  %2395 = vmatmul.msk.f32.gmra.mxu0 %vm1172_vm6, %v1389_v8 }
 0x415   :  { %2367 = vmatmul.msk.f32.gmra.mxu2 %vm1172_vm6, %v1134_v9  ;;  %2396 = vmatmul.msk.f32.gmra.mxu0 %vm1172_vm6, %v1390_v10 }
 0x41d   :  { %2368 = vmatmul.msk.f32.gmra.mxu2 %vm1172_vm6, %v1135_v11  ;;  %2397 = vmatmul.msk.f32.gmra.mxu0 %vm1172_vm6, %v1391_v12  ;;  %v1589_v11 = vpop.permute.xlu2 %1588 }
 0x425   :  { %2369 = vmatmul.msk.f32.gmra.mxu2 %vm1172_vm6, %v1136_v13  ;;  %2398 = vmatmul.msk.f32.gmra.mxu0 %vm1172_vm6, %v1392_v14  ;;  %v1365_v13 = vpop.f32.mrf.mxu3 }
 0x42d   :  { %2399 = vmatmul.msk.f32.gmra.mxu0 %vm1172_vm6, %v1393_v20 }
 0x440   :  { %v1235_v23 = vpop.f32.mrf.mxu2 }
 0x441   :  { %v1339_v24 = vadd.f32 %v1338_v15, %v1235_v23 }
 0x442   :  { %v1481_v25 = vpop.f32.mrf.mxu0 }
 0x443   :  { %v1523_v27 = vadd.f32 %v1481_v25, %v1339_v24  ;;  %v1599_v25 = vpop.permute.xlu1 %1598 }
 0x445   :  { %v1621_v29 = vadd.f32 %v1554_v28, %v1523_v27 }
 0x447   :  { %2401 = vmatmul.msk.f32.vlgmr.msrb.gmra.mxu1 %vm1637_vm8, %v1621_v29  ;;  %2416 = vmatmul.msk.f32.vlgmr.msrb.gmra.mxu2 %vm1637_vm8, %v1621_v29 }
 0x448   :  { %v1238_v30 = vpop.f32.mrf.mxu2 }
 0x449   :  { %v1342_v31 = vadd.f32 %v1341_v21, %v1238_v30  ;;  %v1368_v21 = vpop.f32.mrf.mxu3 }
 0x44a   :  { %v1484_v32 = vpop.f32.mrf.mxu0 }
 0x44b   :  { %v1524_v33 = vadd.f32 %v1484_v32, %v1342_v31  ;;  %v1604_v32 = vpop.permute.xlu2 %1603 }
 0x44d   :  { %v1622_v36 = vadd.f32 %v1559_v34, %v1524_v33 }
 0x44f   :  { %2402 = vmatmul.msk.f32.gmra.mxu1 %vm1637_vm8, %v1622_v36  ;;  %2417 = vmatmul.msk.f32.gmra.mxu2 %vm1637_vm8, %v1622_v36 }
 0x450   :  { %v1241_v37 = vpop.f32.mrf.mxu2 }
 0x451   :  { %v1345_v38 = vadd.f32 %v1344_v22, %v1241_v37  ;;  %v1371_v30 = vpop.f32.mrf.mxu3 }
 0x452   :  { %v1487_v39 = vpop.f32.mrf.mxu0 }
 0x453   :  { %v1525_v40 = vadd.f32 %v1487_v39, %v1345_v38  ;;  %v1609_v38 = vpop.permute.xlu0 %1608 }
 0x455   :  { %v1623_v42 = vadd.f32 %v1564_v41, %v1525_v40 }
 0x457   :  { %2403 = vmatmul.msk.f32.gmra.mxu1 %vm1637_vm8, %v1623_v42  ;;  %2418 = vmatmul.msk.f32.gmra.mxu2 %vm1637_vm8, %v1623_v42 }
 0x458   :  { %v1244_v44 = vpop.f32.mrf.mxu2 }
 0x459   :  { %v1348_v45 = vadd.f32 %v1347_v26, %v1244_v44  ;;  %v1374_v39 = vpop.f32.mrf.mxu3 }
 0x45a   :  { %v1490_v46 = vpop.f32.mrf.mxu0 }
 0x45b   :  { %v1526_v47 = vadd.f32 %v1490_v46, %v1348_v45  ;;  %v1614_v45 = vpop.permute.xlu1 %1613 }
 0x45d   :  { %v1624_v49 = vadd.f32 %v1569_v48, %v1526_v47 }
 0x45f   :  { %2404 = vmatmul.msk.f32.gmra.mxu1 %vm1637_vm8, %v1624_v49  ;;  %2419 = vmatmul.msk.f32.gmra.mxu2 %vm1637_vm8, %v1624_v49 }
 0x460   :  { %v1247_v50 = vpop.f32.mrf.mxu2 }
 0x461   :  { %v1351_v52 = vadd.f32 %v1350_v35, %v1247_v50  ;;  %v1377_v47 = vpop.f32.mrf.mxu3 }
 0x462   :  { %v1493_v53 = vpop.f32.mrf.mxu0 }
 0x463   :  { %v1527_v54 = vadd.f32 %v1493_v53, %v1351_v52  ;;  %v1619_v52 = vpop.permute.xlu2 %1618 }
 0x465   :  { %v1625_v56 = vadd.f32 %v1574_v55, %v1527_v54 }
 0x467   :  { %2405 = vmatmul.msk.f32.gmra.mxu1 %vm1637_vm8, %v1625_v56  ;;  %2420 = vmatmul.msk.f32.gmra.mxu2 %vm1637_vm8, %v1625_v56 }
 0x468   :  { %v1250_v58 = vpop.f32.mrf.mxu2 }
 0x469   :  { %v1354_v60 = vadd.f32 %v1353_v43, %v1250_v58 }
 0x46a   :  { %v1496_v61 = vpop.f32.mrf.mxu0 }
 0x46b   :  { %v1528_v63 = vadd.f32 %v1496_v61, %v1354_v60 }
 0x46d   :  { %v1626_v59 = vadd.f32 %v1579_v0, %v1528_v63 }
 0x46f   :  { %2406 = vmatmul.msk.f32.gmra.mxu1 %vm1637_vm8, %v1626_v59  ;;  %2421 = vmatmul.msk.f32.gmra.mxu2 %vm1637_vm8, %v1626_v59 }
 0x470   :  { %v1253_v57 = vpop.f32.mrf.mxu2 }
 0x471   :  { %v1357_v1 = vadd.f32 %v1356_v51, %v1253_v57 }
 0x472   :  { %v1499_v2 = vpop.f32.mrf.mxu0 }
 0x473   :  { %v1529_v3 = vadd.f32 %v1499_v2, %v1357_v1 }
 0x475   :  { %v1627_v6 = vadd.f32 %v1584_v4, %v1529_v3 }
 0x477   :  { %2407 = vmatmul.msk.f32.gmra.mxu1 %vm1637_vm8, %v1627_v6  ;;  %2422 = vmatmul.msk.f32.gmra.mxu2 %vm1637_vm8, %v1627_v6 }
 0x478   :  { %v1256_v7 = vpop.f32.mrf.mxu2 }
 0x479   :  { %v1360_v8 = vadd.f32 %v1359_v62, %v1256_v7 }
 0x47a   :  { %v1502_v9 = vpop.f32.mrf.mxu0 }
 0x47b   :  { %v1530_v10 = vadd.f32 %v1502_v9, %v1360_v8 }
 0x47d   :  { %v1628_v12 = vadd.f32 %v1589_v11, %v1530_v10 }
 0x47f   :  { %2408 = vmatmul.msk.f32.gmra.mxu1 %vm1637_vm8, %v1628_v12  ;;  %2423 = vmatmul.msk.f32.gmra.mxu2 %vm1637_vm8, %v1628_v12 }
 0x480   :  { %v1259_v14 = vpop.f32.mrf.mxu2 }
 0x481   :  { %v1363_v15 = vadd.f32 %v1362_v5, %v1259_v14 }
 0x482   :  { %v1505_v16 = vpop.f32.mrf.mxu0 }
 0x483   :  { %v1531_v17 = vadd.f32 %v1505_v16, %v1363_v15 }
 0x485   :  { %v1629_v19 = vadd.f32 %v1594_v18, %v1531_v17 }
 0x487   :  { %2409 = vmatmul.msk.f32.gmra.mxu1 %vm1637_vm8, %v1629_v19  ;;  %2424 = vmatmul.msk.f32.gmra.mxu2 %vm1637_vm8, %v1629_v19 }
 0x488   :  { %v1262_v20 = vpop.f32.mrf.mxu2 }
 0x489   :  { %v1366_v22 = vadd.f32 %v1365_v13, %v1262_v20 }
 0x48a   :  { %v1508_v23 = vpop.f32.mrf.mxu0 }
 0x48b   :  { %v1532_v24 = vadd.f32 %v1508_v23, %v1366_v22 }
 0x48d   :  { %v1630_v26 = vadd.f32 %v1599_v25, %v1532_v24 }
 0x48f   :  { %2410 = vmatmul.msk.f32.gmra.mxu1 %vm1637_vm8, %v1630_v26  ;;  %2425 = vmatmul.msk.f32.gmra.mxu2 %vm1637_vm8, %v1630_v26 }
 0x490   :  { %v1265_v27 = vpop.f32.mrf.mxu2 }
 0x491   :  { %v1369_v28 = vadd.f32 %v1368_v21, %v1265_v27 }
 0x492   :  { %v1511_v29 = vpop.f32.mrf.mxu0 }
 0x493   :  { %v1533_v31 = vadd.f32 %v1511_v29, %v1369_v28 }
 0x495   :  { %v1631_v33 = vadd.f32 %v1604_v32, %v1533_v31  ;;  %v1821_v32 = vld [vmem:[%s3507_s1 + $0x960] sm:$0xff] }
 0x497   :  { %2411 = vmatmul.msk.f32.gmra.mxu1 %vm1637_vm8, %v1631_v33  ;;  %2426 = vmatmul.msk.f32.gmra.mxu2 %vm1637_vm8, %v1631_v33  ;;  %v1822_v33 = vld [vmem:[%s3507_s1 + $0x970] sm:$0xff] }
 0x498   :  { %v1268_v34 = vpop.f32.mrf.mxu2 }
 0x499   :  { %v1372_v35 = vadd.f32 %v1371_v30, %v1268_v34  ;;  %v1823_v34 = vld [vmem:[%s3507_s1 + $0x980] sm:$0xff] }
 0x49a   :  { %v1514_v36 = vpop.f32.mrf.mxu0 }
 0x49b   :  { %v1534_v37 = vadd.f32 %v1514_v36, %v1372_v35  ;;  %v1824_v35 = vld [vmem:[%s3507_s1 + $0x990] sm:$0xff]  ;;  %v1825_v36 = vld [vmem:[%s3507_s1 + $0x9a0] sm:$0xff] }
 0x49d   :  { %v1632_v40 = vadd.f32 %v1609_v38, %v1534_v37  ;;  %v1826_v37 = vld [vmem:[%s3507_s1 + $0x9b0] sm:$0xff]  ;;  %v1827_v38 = vld [vmem:[%s3507_s1 + $0x9c0] sm:$0x3] }
 0x49f   :  { %2412 = vmatmul.msk.f32.gmra.mxu1 %vm1637_vm8, %v1632_v40  ;;  %2427 = vmatmul.msk.f32.gmra.mxu2 %vm1637_vm8, %v1632_v40  ;;  %v1893_v40 = vld [vmem:[%s3507_s1 + $0x9e0] sm:$0xff] }
 0x4a0   :  { %v1271_v41 = vpop.f32.mrf.mxu2 }
 0x4a1   :  { %v1375_v42 = vadd.f32 %v1374_v39, %v1271_v41  ;;  %v1892_v39 = vld [vmem:[%s3507_s1 + $0x9d0] sm:$0xff] }
 0x4a2   :  { %v1517_v43 = vpop.f32.mrf.mxu0  ;;  %v1894_v41 = vld [vmem:[%s3507_s1 + $0x9f0] sm:$0xff] }
 0x4a3   :  { %v1535_v44 = vadd.f32 %v1517_v43, %v1375_v42  ;;  %v1895_v42 = vld [vmem:[%s3507_s1 + $0xa00] sm:$0xff]  ;;  %v1896_v43 = vld [vmem:[%s3507_s1 + $0xa10] sm:$0xff] }
 0x4a5   :  { %v1633_v46 = vadd.f32 %v1614_v45, %v1535_v44  ;;  %v1897_v44 = vld [vmem:[%s3507_s1 + $0xa20] sm:$0xff]  ;;  %v1898_v45 = vld [vmem:[%s3507_s1 + $0xa30] sm:$0x3] }
 0x4a7   :  { %2413 = vmatmul.msk.f32.gmra.mxu1 %vm1637_vm8, %v1633_v46  ;;  %2428 = vmatmul.msk.f32.gmra.mxu2 %vm1637_vm8, %v1633_v46 }
 0x4a8   :  { %v1274_v48 = vpop.f32.mrf.mxu2 }
 0x4a9   :  { %v1378_v49 = vadd.f32 %v1377_v47, %v1274_v48 }
 0x4aa   :  { %v1520_v50 = vpop.f32.mrf.mxu0 }
 0x4ab   :  { %v1536_v51 = vadd.f32 %v1520_v50, %v1378_v49 }
 0x4ad   :  { %v1634_v53 = vadd.f32 %v1619_v52, %v1536_v51 }
 0x4af   :  { %2414 = vmatmul.msk.f32.gmra.mxu1 %vm1637_vm8, %v1634_v53  ;;  %2429 = vmatmul.msk.f32.gmra.mxu2 %vm1637_vm8, %v1634_v53 }
 0x4c4   :  { %v1701_v54 = vpop.f32.mrf.mxu1 }
 0x4ca   :  { %v1765_v55 = vpop.f32.mrf.mxu2 }
 0x4cb   :  { %v3371_v56 = vmax.f32 %v1701_v54, %v1765_v55 }
 0x4cc   :  { %v1704_v58 = vpop.f32.mrf.mxu1 }
 0x4d2   :  { %v1768_v60 = vpop.f32.mrf.mxu2 }
 0x4d3   :  { %v3373_v61 = vmax.f32 %v1704_v58, %v1768_v60 }
 0x4d4   :  { %v1707_v62 = vpop.f32.mrf.mxu1 }
 0x4da   :  { %v1771_v63 = vpop.f32.mrf.mxu2 }
 0x4db   :  { %v3375_v0 = vmax.f32 %v1707_v62, %v1771_v63 }
 0x4dc   :  { %v1710_v59 = vpop.f32.mrf.mxu1 }
 0x4e2   :  { %v1774_v57 = vpop.f32.mrf.mxu2 }
 0x4e3   :  { %v1810_v1 = vmax.f32 %v1710_v59, %v1774_v57 }
 0x4e4   :  { %v1713_v2 = vpop.f32.mrf.mxu1 }
 0x4ea   :  { %v1777_v3 = vpop.f32.mrf.mxu2 }
 0x4eb   :  { %v1811_v4 = vmax.f32 %v1713_v2, %v1777_v3 }
 0x4ec   :  { %v1716_v5 = vpop.f32.mrf.mxu1 }
 0x4f2   :  { %v1780_v6 = vpop.f32.mrf.mxu2 }
 0x4f3   :  { %v1812_v7 = vmax.f32 %v1716_v5, %v1780_v6 }
 0x4f4   :  { %v1719_v8 = vpop.f32.mrf.mxu1 }
 0x4fa   :  { %v1783_v9 = vpop.f32.mrf.mxu2 }
 0x4fb   :  { %v1813_v10 = vmax.f32 %v1719_v8, %v1783_v9 }
 0x4fc   :  { %v1722_v11 = vpop.f32.mrf.mxu1 }
 0x502   :  { %v1786_v12 = vpop.f32.mrf.mxu2 }
 0x503   :  { %v1814_v31 = vmax.f32 %v1722_v11, %v1786_v12 }
 0x504   :  { %v1725_v13 = vpop.f32.mrf.mxu1 }
 0x50a   :  { %v1789_v14 = vpop.f32.mrf.mxu2 }
 0x50b   :  { %v1815_v30 = vmax.f32 %v1725_v13, %v1789_v14  ;;  %v1974_v14 = vld [vmem:[%s3507_s1 + $0xa80] sm:$0xff] }
 0x50c   :  { %v1728_v15 = vpop.f32.mrf.mxu1 }
 0x512   :  { %v1792_v16 = vpop.f32.mrf.mxu2 }
 0x513   :  { %v1816_v29 = vmax.f32 %v1728_v15, %v1792_v16  ;;  %v1975_v16 = vld [vmem:[%s3507_s1 + $0xa90] sm:$0x3] }
 0x514   :  { %v1731_v17 = vpop.f32.mrf.mxu1 }
 0x51a   :  { %v1795_v18 = vpop.f32.mrf.mxu2 }
 0x51b   :  { %v1817_v28 = vmax.f32 %v1731_v17, %v1795_v18 }
 0x51c   :  { %v1734_v19 = vpop.f32.mrf.mxu1 }
 0x522   :  { %v1798_v20 = vpop.f32.mrf.mxu2 }
 0x523   :  { %v1818_v27 = vmax.f32 %v1734_v19, %v1798_v20 }
 0x524   :  { %v1737_v21 = vpop.f32.mrf.mxu1 }
 0x52a   :  { %v1801_v22 = vpop.f32.mrf.mxu2 }
 0x52b   :  { %v1819_v26 = vmax.f32 %v1737_v21, %v1801_v22 }
 0x52c   :  { %v1740_v23 = vpop.f32.mrf.mxu1 }
 0x532   :  { %v1804_v24 = vpop.f32.mrf.mxu2 }
 0x533   :  { %v1820_v25 = vmax.f32 %v1740_v23, %v1804_v24 }
 0x535   :  { %2430 = vmatpush.msk.msrb.mxu3 %vm1850_vm9, %v1820_v25 }
 0x537   :  { %1857 = vmatpush.msrb.mxu3 %v1819_v26 }
 0x539   :  { %1858 = vmatpush.msrb.mxu3 %v1818_v27 }
 0x53b   :  { %1859 = vmatpush.msrb.mxu3 %v1817_v28 }
 0x53d   :  { %1860 = vmatpush.msrb.mxu3 %v1816_v29 }
 0x53f   :  { %1861 = vmatpush.msrb.mxu3 %v1815_v30 }
 0x541   :  { %1862 = vmatpush.msrb.mxu3 %v1814_v31 }
 0x543   :  { %1863 = vmatpush.msrb.mxu3 %v1813_v10 }
 0x545   :  { %1864 = vmatpush.msrb.mxu3 %v1812_v7 }
 0x547   :  { %1865 = vmatpush.msrb.mxu3 %v1811_v4 }
 0x549   :  { %1866 = vmatpush.msrb.mxu3 %v1810_v1 }
 0x54b   :  { %1867 = vmatpush.msrb.mxu3 %v3375_v0 }
 0x54d   :  { %1868 = vmatpush.msrb.mxu3 %v3373_v61 }
 0x54f   :  { %1869 = vmatpush.msrb.mxu3 %v3371_v56 }
 0x550   :  { %2431 = vmatmul.msk.f32.vlgmr.msrb.gmra.mxu3 %vm1828_vm10, %v1821_v32 }
 0x551   :  { %2438 = vmatpush.msk.msra.mxu3 %vm1850_vm9, %v1820_v25 }
 0x553   :  { %1923 = vmatpush.msra.mxu3 %v1819_v26 }
 0x555   :  { %1924 = vmatpush.msra.mxu3 %v1818_v27 }
 0x557   :  { %1925 = vmatpush.msra.mxu3 %v1817_v28 }
 0x558   :  { %2432 = vmatmul.msk.f32.gmra.mxu3 %vm1828_vm10, %v1822_v33 }
 0x559   :  { %1926 = vmatpush.msra.mxu3 %v1816_v29 }
 0x55b   :  { %1927 = vmatpush.msra.mxu3 %v1815_v30 }
 0x55d   :  { %1928 = vmatpush.msra.mxu3 %v1814_v31  ;;  %v2072_v31 = vld [vmem:[%s3507_s1 + $0xac0] sm:$0xff] }
 0x55f   :  { %1929 = vmatpush.msra.mxu3 %v1813_v10 }
 0x560   :  { %2433 = vmatmul.msk.f32.gmra.mxu3 %vm1828_vm10, %v1823_v34 }
 0x561   :  { %1930 = vmatpush.msra.mxu3 %v1812_v7 }
 0x563   :  { %1931 = vmatpush.msra.mxu3 %v1811_v4 }
 0x565   :  { %1932 = vmatpush.msra.mxu3 %v1810_v1 }
 0x567   :  { %1933 = vmatpush.msra.mxu3 %v3375_v0 }
 0x568   :  { %2434 = vmatmul.msk.f32.gmra.mxu3 %vm1828_vm10, %v1824_v35 }
 0x569   :  { %1934 = vmatpush.msra.mxu3 %v3373_v61 }
 0x56b   :  { %1935 = vmatpush.msra.mxu3 %v3371_v56 }
 0x570   :  { %2435 = vmatmul.msk.f32.gmra.mxu3 %vm1828_vm10, %v1825_v36 }
 0x578   :  { %2436 = vmatmul.msk.f32.gmra.mxu3 %vm1828_vm10, %v1826_v37 }
 0x580   :  { %2437 = vmatmul.msk.f32.gmra.mxu3 %vm1828_vm10, %v1827_v38 }
 0x588   :  { %2439 = vmatmul.msk.f32.vlgmr.msra.gmra.mxu3 %vm1828_vm10, %v1892_v39 }
 0x590   :  { %2440 = vmatmul.msk.f32.gmra.mxu3 %vm1828_vm10, %v1893_v40 }
 0x598   :  { %2441 = vmatmul.msk.f32.gmra.mxu3 %vm1828_vm10, %v1894_v41  ;;  %v2073_v41 = vld [vmem:[%s3507_s1 + $0xad0] sm:$0x3] }
 0x5a0   :  { %2442 = vmatmul.msk.f32.gmra.mxu3 %vm1828_vm10, %v1895_v42  ;;  %v2011_v42 = vld [vmem:[%s3507_s1 + $0xaa0] sm:$0xff] }
 0x5a8   :  { %2443 = vmatmul.msk.f32.gmra.mxu3 %vm1828_vm10, %v1896_v43 }
 0x5b0   :  { %2444 = vmatmul.msk.f32.gmra.mxu3 %vm1828_vm10, %v1897_v44 }
 0x5b8   :  { %2445 = vmatmul.msk.f32.gmra.mxu3 %vm1828_vm10, %v1898_v45 }
 0x5d3   :  { %v1871_v46 = vpop.f32.mrf.mxu3 }
 0x5db   :  { %v1874_v47 = vpop.f32.mrf.mxu3 }
 0x5e3   :  { %v1877_v48 = vpop.f32.mrf.mxu3 }
 0x5eb   :  { %v1880_v49 = vpop.f32.mrf.mxu3 }
 0x5f3   :  { %v1883_v50 = vpop.f32.mrf.mxu3 }
 0x5fb   :  { %v1886_v51 = vpop.f32.mrf.mxu3 }
 0x603   :  { %v1889_v52 = vpop.f32.mrf.mxu3 }
 0x60b   :  { %v1937_v53 = vpop.f32.mrf.mxu3 }
 0x60c   :  { %v1958_v54 = vmax.f32 %v1871_v46, %v1937_v53 }
 0x60e   :  { %v1965_v58 = vmax.f32 %v1958_v54, 0.0 }
 0x613   :  { %v1940_v55 = vpop.f32.mrf.mxu3 }
 0x614   :  { %v1959_v56 = vmax.f32 %v1874_v47, %v1940_v55 }
 0x616   :  { %v1966_v60 = vmax.f32 %v1959_v56, 0.0  ;;  %v2127_v56 = vld [vmem:[%s3507_s1 + $0xae0] sm:$0xff] }
 0x618   :  { %v2544_v61 = vpack.i.bf16 %v1965_v58, %v1966_v60 }
 0x61b   :  { %v1943_v62 = vpop.f32.mrf.mxu3 }
 0x61c   :  { %v1960_v63 = vmax.f32 %v1877_v48, %v1943_v62  ;;  %v2182_v62 = vld [vmem:[%s3507_s1 + $0xb00] sm:$0xff] }
 0x61e   :  { %v1967_v57 = vmax.f32 %v1960_v63, 0.0  ;;  %v2128_v63 = vld [vmem:[%s3507_s1 + $0xaf0] sm:$0x3] }
 0x623   :  { %v1946_v0 = vpop.f32.mrf.mxu3 }
 0x624   :  { %v1961_v59 = vmax.f32 %v1880_v49, %v1946_v0  ;;  %v2012_v49 = vld [vmem:[%s3507_s1 + $0xab0] sm:$0x3] }
 0x625   :  { %v2183_v0 = vld [vmem:[%s3507_s1 + $0xb10] sm:$0x3] }
 0x626   :  { %v1968_v1 = vmax.f32 %v1961_v59, 0.0 }
 0x628   :  { %v2524_v2 = vpack.i.bf16 %v1967_v57, %v1968_v1 }
 0x62a   :  { %2525 = vrot.lane.b32.xlu2 %v2524_v2, %s2579_s11  ;;  %2520 = vrot.lane.b32.xlu1 %v2524_v2, %s2580_s12 }
 0x62b   :  { %v1949_v3 = vpop.f32.mrf.mxu3 }
 0x62c   :  { %v1962_v4 = vmax.f32 %v1883_v50, %v1949_v3  ;;  %v1972_v3 = vld [vmem:[%s3507_s1 + $0xb20] sm:$0xff] }
 0x62e   :  { %v1969_v7 = vmax.f32 %v1962_v4, 0.0 }
 0x633   :  { %v1952_v5 = vpop.f32.mrf.mxu3 }
 0x634   :  { %v1963_v6 = vmax.f32 %v1886_v51, %v1952_v5 }
 0x636   :  { %v1970_v8 = vmax.f32 %v1963_v6, 0.0 }
 0x638   :  { %v2534_v9 = vpack.i.bf16 %v1969_v7, %v1970_v8 }
 0x63a   :  { %2535 = vrot.lane.b32.xlu0 %v2534_v9, %s2579_s11  ;;  %2530 = vrot.lane.b32.xlu1 %v2534_v9, %s2580_s12 }
 0x63b   :  { %v1955_v10 = vpop.f32.mrf.mxu3 }
 0x63c   :  { %v1964_v11 = vmax.f32 %v1889_v52, %v1955_v10 }
 0x63e   :  { %v1971_v12 = vmax.f32 %v1964_v11, 0.0 }
 0x640   :  { %2086 = vrot.lane.b32.xlu2 %v1971_v12, %s2579_s11  ;;  %2446 = vmatpush.msk.msrb.mxu0 %vm666_vm2, %v1971_v12 }
 0x642   :  { %2545 = vrot.lane.b32.xlu1 %v2544_v61, %s2579_s11  ;;  %2031 = vrot.lane.b32.xlu0 %v1971_v12, %s2580_s12 }
 0x643   :  { %1996 = vmatpush.msrb.mxu0 %v1970_v8  ;;  %v1973_v8 = vld [vmem:[%s3507_s1 + $0xb30] sm:$0x3] }
 0x645   :  { %1997 = vmatpush.msrb.mxu0 %v1969_v7 }
 0x647   :  { %1998 = vmatpush.msrb.mxu0 %v1968_v1 }
 0x648   :  { %2141 = vrot.lane.b32.xlu2 %v1971_v12, %s2582_s13 }
 0x649   :  { %1999 = vmatpush.msrb.mxu0 %v1967_v57 }
 0x64a   :  { %2196 = vrot.lane.b32.xlu1 %v1971_v12, %s2583_s14  ;;  %2540 = vrot.lane.b32.xlu0 %v2544_v61, %s2580_s12 }
 0x64b   :  { %2000 = vmatpush.msrb.mxu0 %v1966_v60 }
 0x64d   :  { %2001 = vmatpush.msrb.mxu0 %v1965_v58 }
 0x64e   :  { %2447 = vmatmul.msk.f32.vlgmr.msrb.gmra.mxu0 %vm1976_vm11, %v1974_v14 }
 0x650   :  { %2555 = vrot.lane.b32.xlu2 %v2534_v9, %s2583_s14 }
 0x652   :  { %2565 = vrot.lane.b32.xlu1 %v2524_v2, %s2583_s14  ;;  %2550 = vrot.lane.b32.xlu0 %v2534_v9, %s2582_s13 }
 0x656   :  { %2448 = vmatmul.msk.f32.gmra.mxu0 %vm1976_vm11, %v1975_v16 }
 0x658   :  { %2570 = vrot.lane.b32.xlu2 %v2544_v61, %s2582_s13 }
 0x65a   :  { %2560 = vrot.lane.b32.xlu0 %v2524_v2, %s2582_s13 }
 0x662   :  { %2575 = vrot.lane.b32.xlu0 %v2544_v61, %s2583_s14 }
 0x684   :  { %v2526_v13 = vpop.permute.xlu2 %2525 }
 0x685   :  { %v2527_v23 = vunpack.i.l.bf16 %v2526_v13  ;;  %v2528_v24 = vunpack.i.h.bf16 %v2526_v13 }
 0x69a   :  { %v2087_v15 = vpop.permute.xlu2 %2086 }
 0x69b   :  { %2452 = vmatpush.msk.msra.mxu0 %vm666_vm2, %v2087_v15 }
 0x69c   :  { %v2521_v17 = vpop.permute.xlu1 %2520 }
 0x69d   :  { %v2522_v32 = vunpack.i.l.bf16 %v2521_v17  ;;  %v2523_v34 = vunpack.i.h.bf16 %v2521_v17 }
 0x6a2   :  { %v2142_v22 = vpop.permute.xlu2 %2141 }
 0x6aa   :  { %v2556_v33 = vpop.permute.xlu2 %2555 }
 0x6ab   :  { %v2557_v37 = vunpack.i.l.bf16 %v2556_v33  ;;  %v2558_v39 = vunpack.i.h.bf16 %v2556_v33 }
 0x6ac   :  { %v2536_v18 = vpop.permute.xlu0 %2535  ;;  %v2531_v19 = vpop.permute.xlu1 %2530 }
 0x6ad   :  { %v2537_v20 = vunpack.i.l.bf16 %v2536_v18  ;;  %v2538_v21 = vunpack.i.h.bf16 %v2536_v18  ;;  %v2532_v27 = vunpack.i.l.bf16 %v2531_v19  ;;  %v2533_v29 = vunpack.i.h.bf16 %v2531_v19 }
 0x6af   :  { %2112 = vmatpush.msra.mxu0 %v2537_v20 }
 0x6b1   :  { %2113 = vmatpush.msra.mxu0 %v2538_v21 }
 0x6b2   :  { %v2571_v52 = vpop.permute.xlu2 %2570 }
 0x6b3   :  { %2114 = vmatpush.msra.mxu0 %v2527_v23  ;;  %v2572_v54 = vunpack.i.l.bf16 %v2571_v52  ;;  %v2573_v55 = vunpack.i.h.bf16 %v2571_v52 }
 0x6b4   :  { %v2546_v25 = vpop.permute.xlu1 %2545  ;;  %v2032_v26 = vpop.permute.xlu0 %2031 }
 0x6b5   :  { %v2547_v28 = vunpack.i.l.bf16 %v2546_v25  ;;  %2449 = vmatpush.msk.msra.mxu1 %vm666_vm2, %v2032_v26  ;;  %2115 = vmatpush.msra.mxu0 %v2528_v24  ;;  %v2548_v30 = vunpack.i.h.bf16 %v2546_v25 }
 0x6b7   :  { %2057 = vmatpush.msra.mxu1 %v2532_v27  ;;  %2116 = vmatpush.msra.mxu0 %v2547_v28 }
 0x6b9   :  { %2058 = vmatpush.msra.mxu1 %v2533_v29  ;;  %2117 = vmatpush.msra.mxu0 %v2548_v30 }
 0x6ba   :  { %2453 = vmatmul.msk.f32.vlgmr.msra.gmra.mxu0 %vm1976_vm11, %v2072_v31 }
 0x6bb   :  { %2059 = vmatpush.msra.mxu1 %v2522_v32 }
 0x6bc   :  { %v2197_v35 = vpop.permute.xlu1 %2196  ;;  %v2541_v36 = vpop.permute.xlu0 %2540 }
 0x6bd   :  { %v2542_v38 = vunpack.i.l.bf16 %v2541_v36  ;;  %2060 = vmatpush.msra.mxu1 %v2523_v34  ;;  %2458 = vmatpush.msk.msrb.mxu0 %vm666_vm2, %v2197_v35  ;;  %v2543_v40 = vunpack.i.h.bf16 %v2541_v36 }
 0x6bf   :  { %2061 = vmatpush.msra.mxu1 %v2542_v38  ;;  %2222 = vmatpush.msrb.mxu0 %v2557_v37 }
 0x6c1   :  { %2062 = vmatpush.msra.mxu1 %v2543_v40  ;;  %2223 = vmatpush.msrb.mxu0 %v2558_v39 }
 0x6c2   :  { %2454 = vmatmul.msk.f32.gmra.mxu0 %vm1976_vm11, %v2073_v41  ;;  %2450 = vmatmul.msk.f32.vlgmr.msra.gmra.mxu1 %vm1976_vm11, %v2011_v42 }
 0x6c3   :  { %2455 = vmatpush.msk.msrb.mxu1 %vm666_vm2, %v2142_v22 }
 0x6c4   :  { %v2566_v43 = vpop.permute.xlu1 %2565  ;;  %v2551_v44 = vpop.permute.xlu0 %2550 }
 0x6c5   :  { %v2567_v45 = vunpack.i.l.bf16 %v2566_v43  ;;  %v2552_v46 = vunpack.i.l.bf16 %v2551_v44  ;;  %v2568_v47 = vunpack.i.h.bf16 %v2566_v43  ;;  %v2553_v48 = vunpack.i.h.bf16 %v2551_v44 }
 0x6c7   :  { %2167 = vmatpush.msrb.mxu1 %v2552_v46  ;;  %2224 = vmatpush.msrb.mxu0 %v2567_v45 }
 0x6c9   :  { %2168 = vmatpush.msrb.mxu1 %v2553_v48  ;;  %2225 = vmatpush.msrb.mxu0 %v2568_v47 }
 0x6ca   :  { %2451 = vmatmul.msk.f32.gmra.mxu1 %vm1976_vm11, %v2012_v49 }
 0x6cb   :  { %v2003_v59 = vpop.f32.mrf.mxu0 }
 0x6cc   :  { %v2561_v50 = vpop.permute.xlu0 %2560  ;;  %v2009_v5 = vadd.f32 %v2003_v59, %v1972_v3 }
 0x6cd   :  { %v2562_v51 = vunpack.i.l.bf16 %v2561_v50  ;;  %v2563_v53 = vunpack.i.h.bf16 %v2561_v50 }
 0x6cf   :  { %2169 = vmatpush.msrb.mxu1 %v2562_v51 }
 0x6d1   :  { %2170 = vmatpush.msrb.mxu1 %v2563_v53 }
 0x6d3   :  { %2171 = vmatpush.msrb.mxu1 %v2572_v54  ;;  %v2006_v57 = vpop.f32.mrf.mxu0 }
 0x6d4   :  { %v2576_v58 = vpop.permute.xlu0 %2575  ;;  %v2010_v11 = vadd.f32 %v2006_v57, %v1973_v8 }
 0x6d5   :  { %v2577_v60 = vunpack.i.l.bf16 %v2576_v58  ;;  %2172 = vmatpush.msrb.mxu1 %v2573_v55  ;;  %v2578_v61 = vunpack.i.h.bf16 %v2576_v58 }
 0x6d6   :  { %2456 = vmatmul.msk.f32.vlgmr.msrb.gmra.mxu1 %vm1976_vm11, %v2127_v56 }
 0x6d7   :  { %2226 = vmatpush.msrb.mxu0 %v2577_v60 }
 0x6d9   :  { %2227 = vmatpush.msrb.mxu0 %v2578_v61 }
 0x6da   :  { %2459 = vmatmul.msk.f32.vlgmr.msrb.gmra.mxu0 %vm1976_vm11, %v2182_v62 }
 0x6de   :  { %2457 = vmatmul.msk.f32.gmra.mxu1 %vm1976_vm11, %v2128_v63 }
 0x6e2   :  { %2460 = vmatmul.msk.f32.gmra.mxu0 %vm1976_vm11, %v2183_v0 }
 0x737   :  { %v2119_v2 = vpop.f32.mrf.mxu0 }
 0x73f   :  { %v2064_v1 = vpop.f32.mrf.mxu1  ;;  %v2122_v6 = vpop.f32.mrf.mxu0 }
 0x740   :  { %v2070_v7 = vadd.f32 %v2064_v1, %v2009_v5 }
 0x742   :  { %v2125_v10 = vadd.f32 %v2119_v2, %v2070_v7 }
 0x747   :  { %v2067_v4 = vpop.f32.mrf.mxu1 }
 0x748   :  { %v2071_v14 = vadd.f32 %v2067_v4, %v2010_v11 }
 0x74a   :  { %v2126_v17 = vadd.f32 %v2122_v6, %v2071_v14 }
 0x753   :  { %v2174_v9 = vpop.f32.mrf.mxu1 }
 0x754   :  { %v2180_v12 = vadd.f32 %v2174_v9, %v2125_v10 }
 0x757   :  { %v2229_v13 = vpop.f32.mrf.mxu0 }
 0x758   :  { %v2235_v15 = vadd.f32 %v2229_v13, %v2180_v12 }
 0x75a   :  { %2238 = vst.msk [vmem:[%s3508_s2] sm:$0xff] %vm2237_vm12, %v2235_v15 }
 0x75b   :  { %v2177_v16 = vpop.f32.mrf.mxu1 }
 0x75c   :  { %v2181_v18 = vadd.f32 %v2177_v16, %v2126_v17 }
 0x75f   :  { %v2232_v19 = vpop.f32.mrf.mxu0 }
 0x760   :  { %v2236_v20 = vadd.f32 %v2232_v19, %v2181_v18 }
 0x762   :  { %2240 = vst.msk [vmem:[%s3508_s2 + $0x8] sm:$0x3] %vm2239_vm13, %v2236_v20 }

</bundles_post_ra>
